<compile_context>
chip_gen: v5e
topology: v5e:2x2
jax: 0.10.0
libtpu: 0.0.40
codegen_flags: <defaults>
</compile_context>

<pallas_src>
import functools

import jax
import jax.numpy as jnp
from jax import lax
from jax.experimental import pallas as pl
from jax.experimental.pallas import tpu as pltpu


# ----------------------------------------------------------------------------
# tuning constants / helpers
# ----------------------------------------------------------------------------
# Per-step VMEM budget used to pick the row-tile height.  It counts the
# double-buffered bf16 input window plus the kw-1 in-kernel shifted copies, the
# f32 accumulator, and the double-buffered bf16 output tile, all with
# lane-padded (multiple-of-128) channel counts.  Real usage stays under the
# explicit 48 MiB scoped limit (safe on v7x's 64 MiB VMEM, far below v5e/v6e's
# 128 MiB) while being much larger than the previous 1 MiB window cap.
_TILE_VMEM_BYTES = 40 * 1024 * 1024
_VMEM_LIMIT_BYTES = 48 * 1024 * 1024
_LANE = 128


def _round_up(x, m):
    return (x + m - 1) // m * m


def _cdiv(a, b):
    return (a + b - 1) // b


def _apply_act(x, act):
    if act == "none":
        return x
    if act == "relu":
        return jnp.maximum(x, 0.0)
    if act == "leaky":                       # LeakyReLU(0.2)
        return jnp.where(x >= 0.0, x, 0.2 * x)
    if act == "tanh":
        return jnp.tanh(x)
    raise ValueError(f"unknown act {act}")


def _cparams():
    return pltpu.CompilerParams(dimension_semantics=("parallel",),
                                vmem_limit_bytes=_VMEM_LIMIT_BYTES)


def _hwio(w_oihw):
    return jnp.transpose(w_oihw, (2, 3, 1, 0))


# ----------------------------------------------------------------------------
# Pallas kernels
# ----------------------------------------------------------------------------
def _conv_acc(x_ref, w_ref, b_ref, kh, kw, th, wp, wo_p):
    """Flat-shift stride-1 conv accumulation.

    x_ref : (1, (th + kh) * wp, Cin) bf16 -- padded window flattened with row
            stride wp (wp % 8 == 0, so dy offsets below are sublane aligned).
    Returns the biased f32 accumulator (th, wo_p, Cout); the trailing wp - wo_p
    columns of every row (cross-row garbage) are dropped before the bias.
    """
    cout = w_ref.shape[-1]
    m = th * wp
    rows = m + (kh - 1) * wp
    acc = jnp.zeros((m, cout), jnp.float32)
    for dx in range(kw):
        # one (cheap) sublane shift per kernel column; the dy slices below are
        # 8-aligned and free.  Operands stay bf16 for the MXU.
        xs = x_ref[0, pl.ds(dx, rows), :]
        for dy in range(kh):
            a = xs[dy * wp:dy * wp + m, :]
            acc = acc + jnp.dot(a, w_ref[dy, dx],
                                preferred_element_type=jnp.float32)
    acc = acc.reshape(th, wp, cout)
    if wo_p < wp:
        acc = acc[:, :wo_p, :]
    return acc + b_ref[...]


def _conv_kernel(x_ref, w_ref, b_ref, o_ref, *, kh, kw, th, wp, wo_p, act):
    acc = _conv_acc(x_ref, w_ref, b_ref, kh, kw, th, wp, wo_p)
    o_ref[0] = _apply_act(acc, act).astype(o_ref.dtype)


def _conv_bn_stats_kernel(x_ref, w_ref, b_ref, o_ref, s_ref, q_ref, *,
                          kh, kw, th, wp, wo_p, wo, ho, g):
    """Conv (no activation) that also emits masked per-channel sum / sum-of-
    squares of its valid output region (pre-activation BatchNorm statistics)."""
    acc = _conv_acc(x_ref, w_ref, b_ref, kh, kw, th, wp, wo_p)
    o_ref[0] = acc.astype(o_ref.dtype)
    rid = lax.broadcasted_iota(jnp.int32, (th, wo_p, 1), 0)
    if g > 1:
        rid = rid + (pl.program_id(0) % g) * th
    cid = lax.broadcasted_iota(jnp.int32, (th, wo_p, 1), 1)
    am = jnp.where((rid < ho) & (cid < wo), acc, 0.0)
    s_ref[0] = jnp.sum(am, axis=(0, 1))[None, :]
    q_ref[0] = jnp.sum(am * acc, axis=(0, 1))[None, :]


def _masked_moments(acc, th, wo_p, wo):
    """Per-channel mean/var over the valid (th, :wo) region of acc (f32)."""
    cnt = float(th * wo)
    if wo_p > wo:
        cid = lax.broadcasted_iota(jnp.int32, (th, wo_p, 1), 1)
        am = jnp.where(cid < wo, acc, 0.0)
    else:
        am = acc
    mean = jnp.sum(am, axis=(0, 1), keepdims=True) / cnt
    var = jnp.sum(am * acc, axis=(0, 1), keepdims=True) / cnt - mean * mean
    return mean, jnp.maximum(var, 0.0)


def _conv_in_relu_kernel(x_ref, w_ref, b_ref, o_ref, *,
                         kh, kw, th, wp, wo_p, wo, eps):
    """Conv + InstanceNorm + ReLU fused (whole image per grid step)."""
    acc = _conv_acc(x_ref, w_ref, b_ref, kh, kw, th, wp, wo_p)
    mean, var = _masked_moments(acc, th, wo_p, wo)
    y = (acc - mean) * lax.rsqrt(var + eps)
    o_ref[0] = jnp.maximum(y, 0.0).astype(o_ref.dtype)


def _conv_in_res_kernel(x_ref, w_ref, b_ref, r_ref, o_ref, *,
                        kh, kw, th, wp, wo_p, wo, eps):
    """Conv + InstanceNorm + residual add fused (whole image per grid step)."""
    acc = _conv_acc(x_ref, w_ref, b_ref, kh, kw, th, wp, wo_p)
    mean, var = _masked_moments(acc, th, wo_p, wo)
    y = (acc - mean) * lax.rsqrt(var + eps) + r_ref[0].astype(jnp.float32)
    o_ref[0] = y.astype(o_ref.dtype)


def _inorm_kernel(x_ref, o_ref, *, eps, act):
    x = x_ref[0].astype(jnp.float32)
    mean = jnp.mean(x, axis=(0, 1), keepdims=True)
    var = jnp.maximum(jnp.mean(x * x, axis=(0, 1), keepdims=True) - mean * mean, 0.0)
    y = (x - mean) * lax.rsqrt(var + eps)
    o_ref[0] = _apply_act(y, act).astype(o_ref.dtype)


def _inorm_res_kernel(x_ref, r_ref, o_ref, *, eps):
    x = x_ref[0].astype(jnp.float32)
    mean = jnp.mean(x, axis=(0, 1), keepdims=True)
    var = jnp.maximum(jnp.mean(x * x, axis=(0, 1), keepdims=True) - mean * mean, 0.0)
    y = (x - mean) * lax.rsqrt(var + eps)
    o_ref[0] = (y + r_ref[0].astype(jnp.float32)).astype(o_ref.dtype)


def _bn_partial_stats_kernel(x_ref, s_ref, q_ref):
    x = x_ref[...].astype(jnp.float32)
    s_ref[0] = jnp.sum(x, axis=0)[None, :]
    q_ref[0] = jnp.sum(x * x, axis=0)[None, :]


def _bn_apply_kernel(x_ref, sc_ref, sh_ref, o_ref, *, act):
    x = x_ref[...].astype(jnp.float32)
    o_ref[...] = _apply_act(x * sc_ref[...] + sh_ref[...], act).astype(o_ref.dtype)


# ----------------------------------------------------------------------------
# conv wrappers (layout glue in XLA, all heavy math in Pallas)
# ----------------------------------------------------------------------------
def _conv2d_nhwc(x, w, b, *, pad=0, pad_mode="constant", act="none",
                 fuse_in=None, residual=None, collect_bn_stats=False,
                 tile_vmem_bytes=_TILE_VMEM_BYTES):
    """Stride-1 NHWC convolution with fused epilogues.

    x:(N,H,W,Cin)  w:(kh,kw,Cin,Cout)  b:(Cout,)
    fuse_in:  None | "relu" | "res" -- fuse InstanceNorm (+ReLU / +residual)
              into the epilogue (requires the whole image in one row tile,
              otherwise falls back to plain conv + standalone instance_norm).
    collect_bn_stats: also return per-channel (sum, sum_sq) over the valid
              output (pre-activation BatchNorm batch statistics).
    """
    x = x.astype(jnp.bfloat16)
    n, h, wdt, cin = x.shape
    kh, kw, _, cout = w.shape
    ho = h + 2 * pad - kh + 1
    wo = wdt + 2 * pad - kw + 1
    wo_p = _round_up(wo, 8)
    wp = _round_up(wdt + 2 * pad, 8)          # row stride of the flat window

    # row-tile height from a lane-padded VMEM estimate (see _TILE_VMEM_BYTES)
    ci_pad = _round_up(cin, _LANE)
    co_pad = _round_up(cout, _LANE)
    per_row = wp * ci_pad * 2 * (kw + 1) + wp * co_pad * 4 + wo_p * co_pad * 4
    th = max(1, min(ho, 512, tile_vmem_bytes // per_row))
    g = _cdiv(ho, th)
    th = _cdiv(ho, g)

    if fuse_in is not None and g > 1:
        # whole image does not fit a single row tile -> unfused fallback
        y = _conv2d_nhwc(x, w, b, pad=pad, pad_mode=pad_mode, act="none",
                         tile_vmem_bytes=tile_vmem_bytes)
        if fuse_in == "relu":
            return instance_norm(y, act="relu")
        return instance_norm(y, residual=residual)

    thk1 = th + kh                 # kh-1 halo rows + 1 row of flat-shift slack
    hp_need = g * th + kh
    if pad and pad_mode != "constant":
        xp = jnp.pad(x, ((0, 0), (pad, pad), (pad, pad), (0, 0)), mode=pad_mode)
        xp = jnp.pad(xp, ((0, 0), (0, hp_need - (h + 2 * pad)),
                          (0, wp - (wdt + 2 * pad)), (0, 0)))
    else:
        xp = jnp.pad(x, ((0, 0), (pad, hp_need - h - pad),
                         (pad, wp - wdt - pad), (0, 0)))

    if g == 1:
        xw = xp.reshape(n, thk1 * wp, cin)
    else:
        # TODO(synk): replace this HBM halo gather with an element-offset
        # BlockSpec / manual async-copy window so overlapping row tiles do not
        # cost an extra HBM write+read pass.
        idx = jnp.arange(g)[:, None] * th + jnp.arange(thk1)[None, :]
        xw = xp[:, idx].reshape(n * g, thk1 * wp, cin)

    wk = w.astype(jnp.bfloat16)
    bias = b.reshape(1, cout).astype(jnp.float32)
    nr = n * g
    r_flat = thk1 * wp

    x_spec = pl.BlockSpec((1, r_flat, cin), lambda i: (i, 0, 0))
    w_spec = pl.BlockSpec((kh, kw, cin, cout), lambda i: (0, 0, 0, 0))
    b_spec = pl.BlockSpec((1, cout), lambda i: (0, 0))
    o_spec = pl.BlockSpec((1, th, wo_p, cout), lambda i: (i, 0, 0, 0))
    out_sds = jax.ShapeDtypeStruct((nr, th, wo_p, cout), jnp.bfloat16)

    if fuse_in == "res":
        res = residual.astype(jnp.bfloat16)
        if wo_p != wo:
            res = jnp.pad(res, ((0, 0), (0, 0), (0, wo_p - wo), (0, 0)))
        out = pl.pallas_call(
            functools.partial(_conv_in_res_kernel, kh=kh, kw=kw, th=th, wp=wp,
                              wo_p=wo_p, wo=wo, eps=1e-5),
            out_shape=out_sds, grid=(nr,),
            in_specs=[x_spec, w_spec, b_spec,
                      pl.BlockSpec((1, th, wo_p, cout), lambda i: (i, 0, 0, 0))],
            out_specs=o_spec, compiler_params=_cparams(),
        )(xw, wk, bias, res)
    elif fuse_in == "relu":
        out = pl.pallas_call(
            functools.partial(_conv_in_relu_kernel, kh=kh, kw=kw, th=th, wp=wp,
                              wo_p=wo_p, wo=wo, eps=1e-5),
            out_shape=out_sds, grid=(nr,),
            in_specs=[x_spec, w_spec, b_spec],
            out_specs=o_spec, compiler_params=_cparams(),
        )(xw, wk, bias)
    elif collect_bn_stats:
        s_spec = pl.BlockSpec((1, 1, cout), lambda i: (i, 0, 0))
        s_sds = jax.ShapeDtypeStruct((nr, 1, cout), jnp.float32)
        out, ssum, ssq = pl.pallas_call(
            functools.partial(_conv_bn_stats_kernel, kh=kh, kw=kw, th=th, wp=wp,
                              wo_p=wo_p, wo=wo, ho=ho, g=g),
            out_shape=(out_sds, s_sds, s_sds), grid=(nr,),
            in_specs=[x_spec, w_spec, b_spec],
            out_specs=(o_spec, s_spec, s_spec), compiler_params=_cparams(),
        )(xw, wk, bias)
    else:
        out = pl.pallas_call(
            functools.partial(_conv_kernel, kh=kh, kw=kw, th=th, wp=wp,
                              wo_p=wo_p, act=act),
            out_shape=out_sds, grid=(nr,),
            in_specs=[x_spec, w_spec, b_spec],
            out_specs=o_spec, compiler_params=_cparams(),
        )(xw, wk, bias)

    out = out.reshape(n, g * th, wo_p, cout)[:, :ho, :wo, :]
    if collect_bn_stats:
        return (out, jnp.sum(ssum.reshape(nr, cout), axis=0),
                jnp.sum(ssq.reshape(nr, cout), axis=0))
    return out


def conv2d_3x3(x, w, b, *, pad_mode="constant", act="none", collect_bn_stats=False):
    """PyTorch Conv2d(k=3, s=1, p=1).  w: (Cout, Cin, 3, 3)."""
    return _conv2d_nhwc(x, _hwio(w), b, pad=1, pad_mode=pad_mode, act=act,
                        collect_bn_stats=collect_bn_stats)


def conv2d_down(x, w, b, *, act="none", collect_bn_stats=False):
    """PyTorch Conv2d(k=4, s=2, p=1) via space-to-depth + stride-1 k2 conv."""
    n, h, wdt, cin = x.shape
    cout = w.shape[0]
    xp = jnp.pad(x.astype(jnp.bfloat16), ((0, 0), (1, 1), (1, 1), (0, 0)))
    hh, wh = (h + 2) // 2, (wdt + 2) // 2
    xs = xp.reshape(n, hh, 2, wh, 2, cin)
    xs = jnp.transpose(xs, (0, 1, 3, 2, 4, 5)).reshape(n, hh, wh, 4 * cin)
    wc = _hwio(w).reshape(2, 2, 2, 2, cin, cout)
    wc = jnp.transpose(wc, (0, 2, 1, 3, 4, 5)).reshape(2, 2, 4 * cin, cout)
    return _conv2d_nhwc(xs, wc, b, pad=0, act=act,
                        collect_bn_stats=collect_bn_stats)


def conv_transpose2d(x, wt, b, *, act="none"):
    """PyTorch ConvTranspose2d(k=4, s=2, p=1).  wt: (Cin, Cout, 4, 4).

    One stride-1 2x2 conv with 4*Cout parity groups followed by an interleave
    (no zero-dilated input, no wasted MACs)."""
    n, h, wdt, cin = x.shape
    cout = wt.shape[1]
    wf = jnp.flip(wt, axis=(2, 3))               # equivalent-conv (flipped) kernel
    groups = []
    for py in range(2):
        for px in range(2):
            sub = wf[:, :, py::2, px::2]         # (Cin, Cout, 2, 2)
            groups.append(jnp.transpose(sub, (2, 3, 0, 1)))
    wc = jnp.concatenate(groups, axis=-1)        # (2, 2, Cin, 4*Cout)
    bc = jnp.tile(b, 4)
    y = _conv2d_nhwc(x, wc, bc, pad=1, act=act)  # (n, h+1, w+1, 4*Cout)
    planes = []
    for py in range(2):
        for px in range(2):
            g0 = (2 * py + px) * cout
            planes.append(y[:, py:py + h, px:px + wdt, g0:g0 + cout])
    p = jnp.stack(planes, axis=0).reshape(2, 2, n, h, wdt, cout)
    # TODO(synk): write the 4 parity groups to strided output positions from the
    # Pallas kernel (or fuse with the following BatchNorm apply) instead of this
    # XLA slice/stack/transpose interleave.
    return jnp.transpose(p, (2, 3, 0, 4, 1, 5)).reshape(n, 2 * h, 2 * wdt, cout)


# ----------------------------------------------------------------------------
# normalization wrappers
# ----------------------------------------------------------------------------
def instance_norm(x, *, act="none", eps=1e-5, residual=None):
    """InstanceNorm2d(affine=False) on whole images.  Fallback path only: the
    residual trunk normally uses the conv-fused IN epilogues."""
    n, h, w, c = x.shape
    x = x.astype(jnp.bfloat16)
    blk = pl.BlockSpec((1, h, w, c), lambda i: (i, 0, 0, 0))
    if residual is None:
        return pl.pallas_call(
            functools.partial(_inorm_kernel, eps=eps, act=act),
            out_shape=jax.ShapeDtypeStruct((n, h, w, c), jnp.bfloat16),
            grid=(n,), in_specs=[blk], out_specs=blk, compiler_params=_cparams(),
        )(x)
    return pl.pallas_call(
        functools.partial(_inorm_res_kernel, eps=eps),
        out_shape=jax.ShapeDtypeStruct((n, h, w, c), jnp.bfloat16),
        grid=(n,), in_specs=[blk, blk], out_specs=blk, compiler_params=_cparams(),
    )(x, residual.astype(jnp.bfloat16))


def batch_norm_stats(x):
    """Per-channel (sum, sum_sq) over (N,H,W): tiled Pallas partials + tiny XLA
    reduction.  Used only where the producing conv cannot emit them (ConvT)."""
    n, h, w, c = x.shape
    m = n * h * w
    x2 = x.astype(jnp.bfloat16).reshape(m, c)
    tm = min(_round_up(m, 8), 2048)
    mp = _round_up(m, tm)
    if mp != m:
        x2 = jnp.pad(x2, ((0, mp - m), (0, 0)))   # zero rows: harmless for sums
    gt = mp // tm
    s_spec = pl.BlockSpec((1, 1, c), lambda i: (i, 0, 0))
    s_sds = jax.ShapeDtypeStruct((gt, 1, c), jnp.float32)
    s, q = pl.pallas_call(
        _bn_partial_stats_kernel,
        out_shape=(s_sds, s_sds), grid=(gt,),
        in_specs=[pl.BlockSpec((tm, c), lambda i: (i, 0))],
        out_specs=(s_spec, s_spec), compiler_params=_cparams(),
    )(x2)
    return jnp.sum(s.reshape(gt, c), axis=0), jnp.sum(q.reshape(gt, c), axis=0)


def batch_norm_apply(x, ssum, ssq, gamma, beta, *, act="none", eps=1e-5):
    """BatchNorm2d (training-mode batch statistics) scale/shift + activation.

    TODO(synk): fold this apply into the consuming conv's prologue (per-channel
    scale/shift/slope inputs) to remove one more HBM read+write pass."""
    n, h, w, c = x.shape
    count = float(n * h * w)
    mean = ssum / count
    var = jnp.maximum(ssq / count - mean * mean, 0.0)
    scale = gamma.astype(jnp.float32) * lax.rsqrt(var + eps)
    shift = beta.astype(jnp.float32) - mean * scale
    m = n * h * w
    x2 = x.astype(jnp.bfloat16).reshape(m, c)
    tm = min(_round_up(m, 8), 2048)
    mp = _round_up(m, tm)
    if mp != m:
        x2 = jnp.pad(x2, ((0, mp - m), (0, 0)))
    gt = mp // tm
    y = pl.pallas_call(
        functools.partial(_bn_apply_kernel, act=act),
        out_shape=jax.ShapeDtypeStruct((mp, c), jnp.bfloat16),
        grid=(gt,),
        in_specs=[pl.BlockSpec((tm, c), lambda i: (i, 0)),
                  pl.BlockSpec((1, c), lambda i: (0, 0)),
                  pl.BlockSpec((1, c), lambda i: (0, 0))],
        out_specs=pl.BlockSpec((tm, c), lambda i: (i, 0)),
        compiler_params=_cparams(),
    )(x2, scale.reshape(1, c), shift.reshape(1, c))
    return y[:m].reshape(n, h, w, c)


def residual_block(x, w1, b1, w2, b2):
    """x + IN(conv2(ReLU(IN(conv1(reflect_pad(x)))))) with both InstanceNorms
    (and the ReLU / residual add) fused into the conv epilogues."""
    y = _conv2d_nhwc(x, _hwio(w1), b1, pad=1, pad_mode="reflect", fuse_in="relu")
    return _conv2d_nhwc(y, _hwio(w2), b2, pad=1, pad_mode="reflect",
                        fuse_in="res", residual=x)


# ----------------------------------------------------------------------------
# GeneratorRes32 (skip=False) parameters + forward
# ----------------------------------------------------------------------------
def init_params(key, in_channels=6, out_channels=3):
    params = {}
    keys = iter(jax.random.split(key, 200))

    def w_(shape, scale=0.05):
        return (scale * jax.random.normal(next(keys), shape)).astype(jnp.float32)

    def bn_(c, prefix):
        params[f"{prefix}_g"] = 1.0 + w_((c,), 0.1)
        params[f"{prefix}_be"] = w_((c,), 0.1)

    ci, co = in_channels, out_channels
    params["down1_w"] = w_((64, ci, 4, 4)); params["down1_b"] = w_((64,))
    params["down2_w"] = w_((128, 64, 4, 4)); params["down2_b"] = w_((128,)); bn_(128, "down2")
    params["down3_w"] = w_((256, 128, 4, 4)); params["down3_b"] = w_((256,)); bn_(256, "down3")
    for i in range(9):
        params[f"res{i}_w1"] = w_((256, 256, 3, 3)); params[f"res{i}_b1"] = w_((256,))
        params[f"res{i}_w2"] = w_((256, 256, 3, 3)); params[f"res{i}_b2"] = w_((256,))
    params["up1_ct_w"] = w_((256 + ci, 128, 4, 4)); params["up1_ct_b"] = w_((128,)); bn_(128, "up1_ct")
    for r in ("r1", "r2"):
        params[f"up1_{r}_w"] = w_((128, 128, 3, 3)); params[f"up1_{r}_b"] = w_((128,)); bn_(128, f"up1_{r}")
    params["up2_ct_w"] = w_((128 + ci, 64, 4, 4)); params["up2_ct_b"] = w_((64,)); bn_(64, "up2_ct")
    for r in ("r1", "r2"):
        params[f"up2_{r}_w"] = w_((64, 64, 3, 3)); params[f"up2_{r}_b"] = w_((64,)); bn_(64, f"up2_{r}")
    params["up3_ct_w"] = w_((64 + ci, co, 4, 4)); params["up3_ct_b"] = w_((co,))
    for r in ("r1", "r2"):
        params[f"up3_{r}_w"] = w_((co, co, 3, 3)); params[f"up3_{r}_b"] = w_((co,))
    return params


def generator_res32_forward(params, x_nchw):
    """GeneratorRes32(skip=False): x (N, Cin, H, W) -> (N, Cout, H, W)."""
    x = jnp.transpose(x_nchw, (0, 2, 3, 1)).astype(jnp.float32)   # NHWC once
    n, h, w, ci = x.shape
    assert h % 8 == 0 and w % 8 == 0, "H/W must be divisible by 8"

    # ---- encoder ----
    d1 = conv2d_down(x, params["down1_w"], params["down1_b"], act="leaky")
    d2, s, q = conv2d_down(d1, params["down2_w"], params["down2_b"],
                           collect_bn_stats=True)
    d2 = batch_norm_apply(d2, s, q, params["down2_g"], params["down2_be"], act="leaky")
    d3, s, q = conv2d_down(d2, params["down3_w"], params["down3_b"],
                           collect_bn_stats=True)
    d3 = batch_norm_apply(d3, s, q, params["down3_g"], params["down3_be"], act="leaky")

    # ---- 9-block residual trunk (conv + InstanceNorm fused) ----
    feat = d3
    for i in range(9):
        feat = residual_block(feat, params[f"res{i}_w1"], params[f"res{i}_b1"],
                              params[f"res{i}_w2"], params[f"res{i}_b2"])

    # TODO(synk): `bilinear_interpolation` is undefined in the reference file;
    # we assume F.interpolate(mode="bilinear", align_corners=False) semantics.
    # The hardcoded 32/64/128 targets are H/8, H/4, H/2 for a 256x256 input, so
    # they are parameterized by the input resolution here.
    ds8 = jax.image.resize(x, (n, h // 8, w // 8, ci), "bilinear",
                           antialias=False).astype(jnp.bfloat16)
    ds4 = jax.image.resize(x, (n, h // 4, w // 4, ci), "bilinear",
                           antialias=False).astype(jnp.bfloat16)
    ds2 = jax.image.resize(x, (n, h // 2, w // 2, ci), "bilinear",
                           antialias=False).astype(jnp.bfloat16)

    def up_block(z, prefix, ds):
        # SimpleUp: ConvT + BN + ReLU;  2x Refine: Conv3x3 + BN + ReLU
        u = conv_transpose2d(z, params[f"{prefix}_ct_w"], params[f"{prefix}_ct_b"])
        su, qu = batch_norm_stats(u)
        u = batch_norm_apply(u, su, qu, params[f"{prefix}_ct_g"],
                             params[f"{prefix}_ct_be"], act="relu")
        for r in ("r1", "r2"):
            u, sr, qr = conv2d_3x3(u, params[f"{prefix}_{r}_w"],
                                   params[f"{prefix}_{r}_b"], collect_bn_stats=True)
            u = batch_norm_apply(u, sr, qr, params[f"{prefix}_{r}_g"],
                                 params[f"{prefix}_{r}_be"], act="relu")
        return jnp.concatenate([u, ds], axis=-1)

    bcat = jnp.concatenate([feat, ds8], axis=-1)
    u1 = up_block(bcat, "up1", ds4)
    u2 = up_block(u1, "up2", ds2)

    # ---- up3 (is_last, no BN): ConvT + ReLU, two plain convs, final Tanh ----
    # TODO(synk): this 3-channel tail runs at ~3/128 lane density; a spatially
    # lane-dense (width-on-lanes) VPU formulation of these convs would speed the
    # tail up by a large factor.
    o = conv_transpose2d(u2, params["up3_ct_w"], params["up3_ct_b"], act="relu")
    o = conv2d_3x3(o, params["up3_r1_w"], params["up3_r1_b"], act="none")
    o = conv2d_3x3(o, params["up3_r2_w"], params["up3_r2_b"], act="tanh")

    return jnp.transpose(o.astype(jnp.float32), (0, 3, 1, 2))


# ----------------------------------------------------------------------------
# pure-JAX references (numerical cross-checks, per perf-review request)
# ----------------------------------------------------------------------------
def _ref_conv2d(x, w_oihw, b, *, stride=1, pad=0, pad_mode="constant"):
    xb = x.astype(jnp.bfloat16).astype(jnp.float32)
    wb = w_oihw.astype(jnp.bfloat16).astype(jnp.float32)
    if pad and pad_mode == "reflect":
        xb = jnp.pad(xb, ((0, 0), (pad, pad), (pad, pad), (0, 0)), mode="reflect")
        padding = ((0, 0), (0, 0))
    else:
        padding = ((pad, pad), (pad, pad))
    out = lax.conv_general_dilated(xb, wb, (stride, stride), padding,
                                   dimension_numbers=("NHWC", "OIHW", "NHWC"))
    return out + b.reshape(1, 1, 1, -1).astype(jnp.float32)


def _ref_conv_transpose2d(x, wt, b):
    xb = x.astype(jnp.bfloat16).astype(jnp.float32)
    wf = jnp.transpose(jnp.flip(wt, axis=(2, 3)), (1, 0, 2, 3))
    wf = wf.astype(jnp.bfloat16).astype(jnp.float32)
    out = lax.conv_general_dilated(xb, wf, (1, 1), ((2, 2), (2, 2)),
                                   lhs_dilation=(2, 2),
                                   dimension_numbers=("NHWC", "OIHW", "NHWC"))
    return out + b.reshape(1, 1, 1, -1).astype(jnp.float32)


def _ref_instance_norm(x, eps=1e-5):
    mean = jnp.mean(x, axis=(1, 2), keepdims=True)
    var = jnp.var(x, axis=(1, 2), keepdims=True)
    return (x - mean) * lax.rsqrt(var + eps)


def _ref_residual_block(x, w1, b1, w2, b2):
    xb = x.astype(jnp.bfloat16).astype(jnp.float32)
    y = _ref_conv2d(xb, w1, b1, stride=1, pad=1, pad_mode="reflect")
    y = jnp.maximum(_ref_instance_norm(y), 0.0)
    y = y.astype(jnp.bfloat16).astype(jnp.float32)
    y = _ref_conv2d(y, w2, b2, stride=1, pad=1, pad_mode="reflect")
    return xb + _ref_instance_norm(y)


def _max_err(a, b):
    return float(jnp.max(jnp.abs(a.astype(jnp.float32) - b.astype(jnp.float32))))


if __name__ == "__main__":
    key = jax.random.PRNGKey(0)
    ks = list(jax.random.split(key, 20))

    # ---- unit checks against lax references --------------------------------
    x3 = jax.random.normal(ks[0], (2, 10, 10, 16), jnp.float32)
    w3 = 0.05 * jax.random.normal(ks[1], (24, 16, 3, 3), jnp.float32)
    b3 = 0.05 * jax.random.normal(ks[2], (24,), jnp.float32)
    ref3 = _ref_conv2d(x3, w3, b3, stride=1, pad=1)
    got3, s3, q3 = conv2d_3x3(x3, w3, b3, collect_bn_stats=True)
    assert _max_err(got3, ref3) < 0.05, "conv2d_3x3 mismatch"
    cnt = 2 * 10 * 10
    assert _max_err(s3 / cnt, jnp.mean(ref3, (0, 1, 2))) < 0.02, "bn mean mismatch"
    assert _max_err(q3 / cnt - (s3 / cnt) ** 2,
                    jnp.var(ref3, (0, 1, 2))) < 0.02, "bn var mismatch"

    # same conv with a tiny tile budget -> multi-row-tile (halo) path
    gott, st, qt = _conv2d_nhwc(x3, _hwio(w3), b3, pad=1, collect_bn_stats=True,
                                tile_vmem_bytes=256 * 1024)
    assert _max_err(gott, ref3) < 0.05, "tiled conv mismatch"
    assert _max_err(st / cnt, jnp.mean(ref3, (0, 1, 2))) < 0.02, "tiled bn mean mismatch"

    xd = jax.random.normal(ks[3], (2, 12, 12, 8), jnp.float32)
    wd = 0.05 * jax.random.normal(ks[4], (16, 8, 4, 4), jnp.float32)
    bd = 0.05 * jax.random.normal(ks[5], (16,), jnp.float32)
    assert _max_err(conv2d_down(xd, wd, bd),
                    _ref_conv2d(xd, wd, bd, stride=2, pad=1)) < 0.05, "down conv mismatch"

    xt = jax.random.normal(ks[6], (2, 6, 6, 8), jnp.float32)
    wt = 0.05 * jax.random.normal(ks[7], (8, 12, 4, 4), jnp.float32)
    bt = 0.05 * jax.random.normal(ks[8], (12,), jnp.float32)
    assert _max_err(conv_transpose2d(xt, wt, bt),
                    _ref_conv_transpose2d(xt, wt, bt)) < 0.05, "conv transpose mismatch"

    xr = jax.random.normal(ks[9], (2, 8, 8, 32), jnp.float32)
    wr1 = 0.05 * jax.random.normal(ks[10], (32, 32, 3, 3), jnp.float32)
    br1 = 0.05 * jax.random.normal(ks[11], (32,), jnp.float32)
    wr2 = 0.05 * jax.random.normal(ks[12], (32, 32, 3, 3), jnp.float32)
    br2 = 0.05 * jax.random.normal(ks[13], (32,), jnp.float32)
    assert _max_err(residual_block(xr, wr1, br1, wr2, br2),
                    _ref_residual_block(xr, wr1, br1, wr2, br2)) < 0.15, \
        "residual block mismatch"

    # fused-IN fallback (image larger than one row tile)
    ref_f = jnp.maximum(_ref_instance_norm(
        _ref_conv2d(xr, wr1, br1, stride=1, pad=1, pad_mode="reflect")), 0.0)
    got_f = _conv2d_nhwc(xr, _hwio(wr1), br1, pad=1, pad_mode="reflect",
                         fuse_in="relu", tile_vmem_bytes=128 * 1024)
    assert _max_err(got_f, ref_f) < 0.1, "fused-IN fallback mismatch"

    # ---- full GeneratorRes32 forward ----------------------------------------
    IN_CH, OUT_CH = 6, 3
    N, H, W = 2, 32, 32          # small; the full model runs at 256x256
    params = init_params(ks[14], in_channels=IN_CH, out_channels=OUT_CH)
    xin = jax.random.normal(ks[15], (N, IN_CH, H, W), jnp.float32)

    fwd = jax.jit(generator_res32_forward)
    y = jax.block_until_ready(fwd(params, xin))

    assert y.shape == (N, OUT_CH, H, W), y.shape
    assert bool(jnp.all(jnp.isfinite(y)))
    assert bool(jnp.all(jnp.abs(y) <= 1.0 + 1e-6))   # tanh output range
    print("KERNEL_OK")
</pallas_src>

<mosaic_0001>
module attributes {stable_mosaic.version = 11 : i64} {
  func.func @_conv_bn_stats_kernel(%arg0: i32, %arg1: memref<1x208x16xbf16, #tpu.memory_space<vmem>>, %arg2: memref<3x3x16x24xbf16, #tpu.memory_space<vmem>>, %arg3: memref<1x24xf32, #tpu.memory_space<vmem>>, %arg4: memref<1x10x16x24xbf16, #tpu.memory_space<vmem>>, %arg5: memref<1x1x24xf32, #tpu.memory_space<vmem>>, %arg6: memref<1x1x24xf32, #tpu.memory_space<vmem>>) attributes {dimension_semantics = [#tpu.dimension_semantics<parallel>], iteration_bounds = array<i64: 2>, scalar_prefetch = 0 : i64, scratch_operands = 0 : i64, tpu.core_type = #tpu.core_type<tc>, window_params = [{transform_indices = @transform_0, window_bounds = array<i64: 1, 208, 16>}, {pipeline_mode = #tpu.pipeline_mode<synchronous>, transform_indices = @transform_1, window_bounds = array<i64: 3, 3, 16, 24>}, {pipeline_mode = #tpu.pipeline_mode<synchronous>, transform_indices = @transform_2, window_bounds = array<i64: 1, 24>}, {transform_indices = @transform_3, window_bounds = array<i64: 1, 10, 16, 24>}, {transform_indices = @transform_4, window_bounds = array<i64: 1, 1, 24>}, {transform_indices = @transform_5, window_bounds = array<i64: 1, 1, 24>}]} {
    %cst = arith.constant 0.000000e+00 : f32
    %0 = vector.broadcast %cst : f32 to vector<160x24xf32>
    %c0 = arith.constant 0 : index
    %c0_0 = arith.constant 0 : index
    %c0_1 = arith.constant 0 : index
    %1 = vector.load %arg1[%c0, %c0_0, %c0_1] : memref<1x208x16xbf16, #tpu.memory_space<vmem>>, vector<1x192x16xbf16>
    %2 = vector.shape_cast %1 : vector<1x192x16xbf16> to vector<192x16xbf16>
    %3 = vector.extract_strided_slice %2 {offsets = [0, 0], sizes = [160, 16], strides = [1, 1]} : vector<192x16xbf16> to vector<160x16xbf16>
    %c0_2 = arith.constant 0 : index
    %c0_3 = arith.constant 0 : index
    %c0_4 = arith.constant 0 : index
    %c0_5 = arith.constant 0 : index
    %4 = vector.load %arg2[%c0_2, %c0_3, %c0_4, %c0_5] : memref<3x3x16x24xbf16, #tpu.memory_space<vmem>>, vector<1x1x16x24xbf16>
    %5 = vector.shape_cast %4 : vector<1x1x16x24xbf16> to vector<16x24xbf16>
    %cst_6 = arith.constant dense<0.000000e+00> : vector<160x24xf32>
    %6 = tpu.matmul %3, %5, %cst_6 {dimension_numbers = #tpu.dot_dimension_numbers<[1], [0], [0], [1], [0, 0, 1, 1], [], []>} : vector<160x16xbf16>, vector<16x24xbf16>, vector<160x24xf32> -> vector<160x24xf32>
    %7 = arith.addf %0, %6 : vector<160x24xf32>
    %8 = vector.extract_strided_slice %2 {offsets = [16, 0], sizes = [160, 16], strides = [1, 1]} : vector<192x16xbf16> to vector<160x16xbf16>
    %c1 = arith.constant 1 : index
    %c0_7 = arith.constant 0 : index
    %c0_8 = arith.constant 0 : index
    %c0_9 = arith.constant 0 : index
    %9 = vector.load %arg2[%c1, %c0_7, %c0_8, %c0_9] : memref<3x3x16x24xbf16, #tpu.memory_space<vmem>>, vector<1x1x16x24xbf16>
    %10 = vector.shape_cast %9 : vector<1x1x16x24xbf16> to vector<16x24xbf16>
    %cst_10 = arith.constant dense<0.000000e+00> : vector<160x24xf32>
    %11 = tpu.matmul %8, %10, %cst_10 {dimension_numbers = #tpu.dot_dimension_numbers<[1], [0], [0], [1], [0, 0, 1, 1], [], []>} : vector<160x16xbf16>, vector<16x24xbf16>, vector<160x24xf32> -> vector<160x24xf32>
    %12 = arith.addf %7, %11 : vector<160x24xf32>
    %13 = vector.extract_strided_slice %2 {offsets = [32, 0], sizes = [160, 16], strides = [1, 1]} : vector<192x16xbf16> to vector<160x16xbf16>
    %c2 = arith.constant 2 : index
    %c0_11 = arith.constant 0 : index
    %c0_12 = arith.constant 0 : index
    %c0_13 = arith.constant 0 : index
    %14 = vector.load %arg2[%c2, %c0_11, %c0_12, %c0_13] : memref<3x3x16x24xbf16, #tpu.memory_space<vmem>>, vector<1x1x16x24xbf16>
    %15 = vector.shape_cast %14 : vector<1x1x16x24xbf16> to vector<16x24xbf16>
    %cst_14 = arith.constant dense<0.000000e+00> : vector<160x24xf32>
    %16 = tpu.matmul %13, %15, %cst_14 {dimension_numbers = #tpu.dot_dimension_numbers<[1], [0], [0], [1], [0, 0, 1, 1], [], []>} : vector<160x16xbf16>, vector<16x24xbf16>, vector<160x24xf32> -> vector<160x24xf32>
    %17 = arith.addf %12, %16 : vector<160x24xf32>
    %c0_15 = arith.constant 0 : index
    %c1_16 = arith.constant 1 : index
    %c0_17 = arith.constant 0 : index
    %18 = vector.load %arg1[%c0_15, %c1_16, %c0_17] : memref<1x208x16xbf16, #tpu.memory_space<vmem>>, vector<1x192x16xbf16>
    %19 = vector.shape_cast %18 : vector<1x192x16xbf16> to vector<192x16xbf16>
    %20 = vector.extract_strided_slice %19 {offsets = [0, 0], sizes = [160, 16], strides = [1, 1]} : vector<192x16xbf16> to vector<160x16xbf16>
    %c0_18 = arith.constant 0 : index
    %c1_19 = arith.constant 1 : index
    %c0_20 = arith.constant 0 : index
    %c0_21 = arith.constant 0 : index
    %21 = vector.load %arg2[%c0_18, %c1_19, %c0_20, %c0_21] : memref<3x3x16x24xbf16, #tpu.memory_space<vmem>>, vector<1x1x16x24xbf16>
    %22 = vector.shape_cast %21 : vector<1x1x16x24xbf16> to vector<16x24xbf16>
    %cst_22 = arith.constant dense<0.000000e+00> : vector<160x24xf32>
    %23 = tpu.matmul %20, %22, %cst_22 {dimension_numbers = #tpu.dot_dimension_numbers<[1], [0], [0], [1], [0, 0, 1, 1], [], []>} : vector<160x16xbf16>, vector<16x24xbf16>, vector<160x24xf32> -> vector<160x24xf32>
    %24 = arith.addf %17, %23 : vector<160x24xf32>
    %25 = vector.extract_strided_slice %19 {offsets = [16, 0], sizes = [160, 16], strides = [1, 1]} : vector<192x16xbf16> to vector<160x16xbf16>
    %c1_23 = arith.constant 1 : index
    %c1_24 = arith.constant 1 : index
    %c0_25 = arith.constant 0 : index
    %c0_26 = arith.constant 0 : index
    %26 = vector.load %arg2[%c1_23, %c1_24, %c0_25, %c0_26] : memref<3x3x16x24xbf16, #tpu.memory_space<vmem>>, vector<1x1x16x24xbf16>
    %27 = vector.shape_cast %26 : vector<1x1x16x24xbf16> to vector<16x24xbf16>
    %cst_27 = arith.constant dense<0.000000e+00> : vector<160x24xf32>
    %28 = tpu.matmul %25, %27, %cst_27 {dimension_numbers = #tpu.dot_dimension_numbers<[1], [0], [0], [1], [0, 0, 1, 1], [], []>} : vector<160x16xbf16>, vector<16x24xbf16>, vector<160x24xf32> -> vector<160x24xf32>
    %29 = arith.addf %24, %28 : vector<160x24xf32>
    %30 = vector.extract_strided_slice %19 {offsets = [32, 0], sizes = [160, 16], strides = [1, 1]} : vector<192x16xbf16> to vector<160x16xbf16>
    %c2_28 = arith.constant 2 : index
    %c1_29 = arith.constant 1 : index
    %c0_30 = arith.constant 0 : index
    %c0_31 = arith.constant 0 : index
    %31 = vector.load %arg2[%c2_28, %c1_29, %c0_30, %c0_31] : memref<3x3x16x24xbf16, #tpu.memory_space<vmem>>, vector<1x1x16x24xbf16>
    %32 = vector.shape_cast %31 : vector<1x1x16x24xbf16> to vector<16x24xbf16>
    %cst_32 = arith.constant dense<0.000000e+00> : vector<160x24xf32>
    %33 = tpu.matmul %30, %32, %cst_32 {dimension_numbers = #tpu.dot_dimension_numbers<[1], [0], [0], [1], [0, 0, 1, 1], [], []>} : vector<160x16xbf16>, vector<16x24xbf16>, vector<160x24xf32> -> vector<160x24xf32>
    %34 = arith.addf %29, %33 : vector<160x24xf32>
    %c0_33 = arith.constant 0 : index
    %c2_34 = arith.constant 2 : index
    %c0_35 = arith.constant 0 : index
    %35 = vector.load %arg1[%c0_33, %c2_34, %c0_35] : memref<1x208x16xbf16, #tpu.memory_space<vmem>>, vector<1x192x16xbf16>
    %36 = vector.shape_cast %35 : vector<1x192x16xbf16> to vector<192x16xbf16>
    %37 = vector.extract_strided_slice %36 {offsets = [0, 0], sizes = [160, 16], strides = [1, 1]} : vector<192x16xbf16> to vector<160x16xbf16>
    %c0_36 = arith.constant 0 : index
    %c2_37 = arith.constant 2 : index
    %c0_38 = arith.constant 0 : index
    %c0_39 = arith.constant 0 : index
    %38 = vector.load %arg2[%c0_36, %c2_37, %c0_38, %c0_39] : memref<3x3x16x24xbf16, #tpu.memory_space<vmem>>, vector<1x1x16x24xbf16>
    %39 = vector.shape_cast %38 : vector<1x1x16x24xbf16> to vector<16x24xbf16>
    %cst_40 = arith.constant dense<0.000000e+00> : vector<160x24xf32>
    %40 = tpu.matmul %37, %39, %cst_40 {dimension_numbers = #tpu.dot_dimension_numbers<[1], [0], [0], [1], [0, 0, 1, 1], [], []>} : vector<160x16xbf16>, vector<16x24xbf16>, vector<160x24xf32> -> vector<160x24xf32>
    %41 = arith.addf %34, %40 : vector<160x24xf32>
    %42 = vector.extract_strided_slice %36 {offsets = [16, 0], sizes = [160, 16], strides = [1, 1]} : vector<192x16xbf16> to vector<160x16xbf16>
    %c1_41 = arith.constant 1 : index
    %c2_42 = arith.constant 2 : index
    %c0_43 = arith.constant 0 : index
    %c0_44 = arith.constant 0 : index
    %43 = vector.load %arg2[%c1_41, %c2_42, %c0_43, %c0_44] : memref<3x3x16x24xbf16, #tpu.memory_space<vmem>>, vector<1x1x16x24xbf16>
    %44 = vector.shape_cast %43 : vector<1x1x16x24xbf16> to vector<16x24xbf16>
    %cst_45 = arith.constant dense<0.000000e+00> : vector<160x24xf32>
    %45 = tpu.matmul %42, %44, %cst_45 {dimension_numbers = #tpu.dot_dimension_numbers<[1], [0], [0], [1], [0, 0, 1, 1], [], []>} : vector<160x16xbf16>, vector<16x24xbf16>, vector<160x24xf32> -> vector<160x24xf32>
    %46 = arith.addf %41, %45 : vector<160x24xf32>
    %47 = vector.extract_strided_slice %36 {offsets = [32, 0], sizes = [160, 16], strides = [1, 1]} : vector<192x16xbf16> to vector<160x16xbf16>
    %c2_46 = arith.constant 2 : index
    %c2_47 = arith.constant 2 : index
    %c0_48 = arith.constant 0 : index
    %c0_49 = arith.constant 0 : index
    %48 = vector.load %arg2[%c2_46, %c2_47, %c0_48, %c0_49] : memref<3x3x16x24xbf16, #tpu.memory_space<vmem>>, vector<1x1x16x24xbf16>
    %49 = vector.shape_cast %48 : vector<1x1x16x24xbf16> to vector<16x24xbf16>
    %cst_50 = arith.constant dense<0.000000e+00> : vector<160x24xf32>
    %50 = tpu.matmul %47, %49, %cst_50 {dimension_numbers = #tpu.dot_dimension_numbers<[1], [0], [0], [1], [0, 0, 1, 1], [], []>} : vector<160x16xbf16>, vector<16x24xbf16>, vector<160x24xf32> -> vector<160x24xf32>
    %51 = arith.addf %46, %50 : vector<160x24xf32>
    %52 = vector.shape_cast %51 : vector<160x24xf32> to vector<10x16x24xf32>
    %c0_51 = arith.constant 0 : index
    %c0_52 = arith.constant 0 : index
    %53 = vector.load %arg3[%c0_51, %c0_52] : memref<1x24xf32, #tpu.memory_space<vmem>>, vector<1x24xf32>
    %54 = vector.shape_cast %53 : vector<1x24xf32> to vector<1x1x24xf32>
    %55 = vector.broadcast %54 : vector<1x1x24xf32> to vector<10x16x24xf32>
    %56 = arith.addf %52, %55 : vector<10x16x24xf32>
    %57 = arith.truncf %56 : vector<10x16x24xf32> to vector<10x16x24xbf16>
    %c0_53 = arith.constant 0 : index
    %c0_54 = arith.constant 0 : index
    %c0_55 = arith.constant 0 : index
    %c0_56 = arith.constant 0 : index
    %58 = vector.load %arg4[%c0_53, %c0_54, %c0_55, %c0_56] : memref<1x10x16x24xbf16, #tpu.memory_space<vmem>>, vector<1x10x16x24xbf16>
    %59 = vector.shape_cast %58 : vector<1x10x16x24xbf16> to vector<10x16x24xbf16>
    %60 = vector.shape_cast %57 : vector<10x16x24xbf16> to vector<1x10x16x24xbf16>
    tpu.vector_store %arg4[%c0_53, %c0_54, %c0_55, %c0_56], %60 {strides = array<i32>} : memref<1x10x16x24xbf16, #tpu.memory_space<vmem>>, vector<1x10x16x24xbf16>,
    %61 = tpu.iota {dimensions = array<i32: 0>} : vector<10x16x1xi32>
    %62 = tpu.iota {dimensions = array<i32: 1>} : vector<10x16x1xi32>
    %c10_i32 = arith.constant 10 : i32
    %63 = vector.broadcast %c10_i32 : i32 to vector<10x16x1xi32>
    %64 = arith.cmpi slt, %61, %63 : vector<10x16x1xi32>
    %c10_i32_57 = arith.constant 10 : i32
    %65 = vector.broadcast %c10_i32_57 : i32 to vector<10x16x1xi32>
    %66 = arith.cmpi slt, %62, %65 : vector<10x16x1xi32>
    %67 = arith.andi %64, %66 : vector<10x16x1xi1>
    %cst_58 = arith.constant 0.000000e+00 : f32
    %68 = vector.shape_cast %67 : vector<10x16x1xi1> to vector<10x16x1xi1>
    %69 = vector.broadcast %68 : vector<10x16x1xi1> to vector<10x16x24xi1>
    %70 = vector.broadcast %cst_58 : f32 to vector<10x16x24xf32>
    %71 = arith.select %69, %56, %70 : vector<10x16x24xi1>, vector<10x16x24xf32>
    %cst_59 = arith.constant dense<0.000000e+00> : vector<24xf32>
    %72 = vector.multi_reduction <add>, %71, %cst_59 [0, 1] : vector<10x16x24xf32> to vector<24xf32>
    %73 = vector.shape_cast %72 : vector<24xf32> to vector<1x24xf32>
    %c0_60 = arith.constant 0 : index
    %c0_61 = arith.constant 0 : index
    %c0_62 = arith.constant 0 : index
    %74 = vector.load %arg5[%c0_60, %c0_61, %c0_62] : memref<1x1x24xf32, #tpu.memory_space<vmem>>, vector<1x1x24xf32>
    %75 = vector.shape_cast %74 : vector<1x1x24xf32> to vector<1x24xf32>
    %76 = vector.shape_cast %73 : vector<1x24xf32> to vector<1x1x24xf32>
    tpu.vector_store %arg5[%c0_60, %c0_61, %c0_62], %76 {strides = array<i32>} : memref<1x1x24xf32, #tpu.memory_space<vmem>>, vector<1x1x24xf32>,
    %77 = arith.mulf %71, %56 : vector<10x16x24xf32>
    %cst_63 = arith.constant dense<0.000000e+00> : vector<24xf32>
    %78 = vector.multi_reduction <add>, %77, %cst_63 [0, 1] : vector<10x16x24xf32> to vector<24xf32>
    %79 = vector.shape_cast %78 : vector<24xf32> to vector<1x24xf32>
    %c0_64 = arith.constant 0 : index
    %c0_65 = arith.constant 0 : index
    %c0_66 = arith.constant 0 : index
    %80 = vector.load %arg6[%c0_64, %c0_65, %c0_66] : memref<1x1x24xf32, #tpu.memory_space<vmem>>, vector<1x1x24xf32>
    %81 = vector.shape_cast %80 : vector<1x1x24xf32> to vector<1x24xf32>
    %82 = vector.shape_cast %79 : vector<1x24xf32> to vector<1x1x24xf32>
    tpu.vector_store %arg6[%c0_64, %c0_65, %c0_66], %82 {strides = array<i32>} : memref<1x1x24xf32, #tpu.memory_space<vmem>>, vector<1x1x24xf32>,
    return
  }
  func.func @transform_0(%arg0: i32) -> (i32, i32, i32) {
    %c0_i32 = arith.constant 0 : i32
    %c0_i32_0 = arith.constant 0 : i32
    %c0_i32_1 = arith.constant 0 : i32
    return %arg0, %c0_i32, %c0_i32_0 : i32, i32, i32
  }
  func.func @transform_1(%arg0: i32) -> (i32, i32, i32, i32) {
    %c0_i32 = arith.constant 0 : i32
    %c0_i32_0 = arith.constant 0 : i32
    %c0_i32_1 = arith.constant 0 : i32
    %c0_i32_2 = arith.constant 0 : i32
    %c0_i32_3 = arith.constant 0 : i32
    return %c0_i32, %c0_i32_0, %c0_i32_1, %c0_i32_2 : i32, i32, i32, i32
  }
  func.func @transform_2(%arg0: i32) -> (i32, i32) {
    %c0_i32 = arith.constant 0 : i32
    %c0_i32_0 = arith.constant 0 : i32
    %c0_i32_1 = arith.constant 0 : i32
    return %c0_i32, %c0_i32_0 : i32, i32
  }
  func.func @transform_3(%arg0: i32) -> (i32, i32, i32, i32) {
    %c0_i32 = arith.constant 0 : i32
    %c0_i32_0 = arith.constant 0 : i32
    %c0_i32_1 = arith.constant 0 : i32
    %c0_i32_2 = arith.constant 0 : i32
    return %arg0, %c0_i32, %c0_i32_0, %c0_i32_1 : i32, i32, i32, i32
  }
  func.func @transform_4(%arg0: i32) -> (i32, i32, i32) {
    %c0_i32 = arith.constant 0 : i32
    %c0_i32_0 = arith.constant 0 : i32
    %c0_i32_1 = arith.constant 0 : i32
    return %arg0, %c0_i32, %c0_i32_0 : i32, i32, i32
  }
  func.func @transform_5(%arg0: i32) -> (i32, i32, i32) {
    %c0_i32 = arith.constant 0 : i32
    %c0_i32_0 = arith.constant 0 : i32
    %c0_i32_1 = arith.constant 0 : i32
    return %arg0, %c0_i32, %c0_i32_0 : i32, i32, i32
  }
}

</mosaic_0001>

<bundles_post_ra>
// kernel: tpu_custom_call.1
= control target key start
LH: loop header
LB: loop body
LE: loop exit
PB: predicated region body
PF: predicated region fallthrough
CT: control target
= control target key end

     0   :  { %11 = vsyncpa [#allocation3], 0  ;;  %s3029_s0 = inlined_call_operand.vmem [shape: bf16[2,208,16], index: 0, kind: input, shape index: {}]   ;;  %s3030_s1 = inlined_call_operand.vmem [shape: bf16[3,3,16,24], index: 1, kind: input, shape index: {}]   ;;  %s3031_s2 = inlined_call_operand.vmem [shape: f32[1,24], index: 2, kind: input, shape index: {}]   ;;  %s3032_s3 = inlined_call_operand.hbm [shape: bf16[2,10,16,24], index: 3, kind: output, shape index: {0}]   ;;  %s3033_s4 = inlined_call_operand.hbm [shape: f32[2,1,24], index: 4, kind: output, shape index: {1}]   ;;  %s3034_s5 = inlined_call_operand.hbm [shape: f32[2,1,24], index: 5, kind: output, shape index: {2}]  }
   0x1   :  { %13 = vsyncpa [#allocation3 + $0x1], 0 }
   0x2   :  { %14 = vsyncpa [#allocation5], 0 }
   0x3   :  { %16 = vsyncpa [#allocation5 + $0x1], 0  ;;  %s2301_s18 = smov 0   ;;  %s2303_s19 = smov 0  }
   0x4   :  { %s2305_s20 = smov 0   ;;  %s2307_s21 = smov 0  }
   0x5 LB: > { %s2322_s22 = sadd.s32 4294967295, %s2267_s21   ;;  %s1806_s23 = sadd.s32 4294967294, %s2267_s21   ;;  %s2267_s21 = sphi %s2307_s21, %s3045_s21   ;;  %s2263_s20 = sphi %s2305_s20, %s3044_s20   ;;  %s2259_s19 = sphi %s2303_s19, %s3043_s19   ;;  %s2255_s18 = sphi %s2301_s18, %s3042_s18  }
   0x6   : > { %s2326_s24 = sadd.s32 1, %s2267_s21   ;;  %s97_s25 = sadd.s32 1, %s2263_s20 }
   0x7   : > { %s94_s26 = ssub.s32 %s2267_s21, %s2326_s24  ;;  %p107_p0 = scmp.ne.s32.totalorder %s2263_s20, %s2259_s19 }
   0x8   : > { %p95_p1 = scmp.eq.s32.totalorder %s94_s26, 0  ;;  %p108_p2 = scmp.eq.s32.totalorder %s2322_s22, 1 }
   0x9   : > { %p113_p3 = scmp.ne.s32.totalorder %s2259_s19, %s2255_s18  ;;  %p114_p4 = scmp.eq.s32.totalorder %s1806_s23, 1 }
   0xa   : > { %s2339_s27 = scalar_select %p95_p1, %s2263_s20, %s97_s25  }
   0xb   : > { %p2341_p5 = por %p108_p2, %p107_p0  ;;  %p2345_p6 = por %p114_p4, %p113_p3 }
   0xc   : > { %p1809_p7 = scmp.ge.s32.totalorder %s2267_s21, 1  ;;  %p198_p8 = scmp.lt.s32.totalorder %s2267_s21, 3 }
   0xe   : > { %p199_p9 = pnand %p1809_p7, %p198_p8 }
  0x10   : > { %202 = sbr.rel (%p199_p9) target bundleno = 564 (0x234), region = 32 }
  0x15   : > { %v2053_v0 = vld [vmem:[%s3030_s1 + $0x18] sm:$0xff]  ;;  %p234_p10 = scmp.lt.s32.totalorder %s2322_s22, 1  ;;  %v2064_v1 = vld [vmem:[%s3030_s1 + $0x8] sm:$0xff]  ;;  %v2052_v2 = vld [vmem:[%s3030_s1] sm:$0xff]  ;;  %vm325_vm0 = vcmask 130048   ;;  %vm1098_vm2 = vcmask 1046528  }
  0x16   : > { %v2065_v3 = vld [vmem:[%s3030_s1 + $0x20] sm:$0xff]  ;;  %363 = vmatpush.bf16.msra.mxu0 %v2053_v0  ;;  %2087 = vmatpush.bf16.msra.mxu1 %v2053_v0  ;;  %v2054_v4 = vld [vmem:[%s3030_s1 + $0x30] sm:$0xff]  ;;  %v2068_v13 = vld [vmem:[%s3030_s1 + $0x28] sm:$0xff]  ;;  %vm665_vm1 = vsmask.f32 7424  ;;  %vm1475_vm3 = vcmask 191488  }
  0x17   : > { %s235_s13 = scalar_select %p234_p10, %s2322_s22, 1  ;;  %2089 = vmatpush.bf16.msra.mxu3 %v2053_v0  ;;  %2088 = vmatpush.bf16.msra.mxu2 %v2053_v0  ;;  %v2067_v9 = vld [vmem:[%s3030_s1 + $0x10] sm:$0xff]  ;;  %v2066_v14 = vld [vmem:[%s3030_s1 + $0x38] sm:$0xff]  ;;  %v2069_v15 = vld [vmem:[%s3030_s1 + $0x40] sm:$0xff]  ;;  %vm1527_vm5 = vcmask 195584  }
  0x18   : > { %s2092_s25 = smul.u32 80, %s2322_s22  ;;  %s2165_s15 = scalar_lea.hbm %s3032_s3, 160 }
  0x19   : > { %s2091_s16 = smul.u32 104, %s235_s13  ;;  %s2774_s13 = sand.u32 1, %s2259_s19  }
  0x1a   : > { %436 = vmatpush.bf16.msrb.mxu1 %v2052_v2  ;;  %906 = vmatpush.bf16.msrb.mxu0 %v2065_v3  ;;  %s1661_s6 = scalar_lea.hbm %s3032_s3, %s2092_s25  ;;  %s1642_s9 = scalar_lea.sflag [#allocation3], %s2774_s13 }
  0x1b   : > { %793 = vmatpush.bf16.msrb.mxu3 %v2064_v1  ;;  %s2371_s26 = scalar_lea.vmem %s3029_s0, %s2091_s16  ;;  %512 = vmatpush.bf16.msrb.mxu2 %v2054_v4  ;;  %s2090_s16 = smul.u32 80, %s2774_s13 }
  0x1c   : > { %v2041_v5 = vld [vmem:[%s2371_s26 + $0x8] sm:$0xff]  ;;  %v2375_v6 = vld [vmem:[%s2371_s26 + $0x20] sm:$0xff]  ;;  %v2384_v8 = vld [vmem:[%s2371_s26 + $0x38] sm:$0xff]  ;;  %s1664_s8 = sshll.u32 %s1661_s6, 4  ;;  %s1665_s8 = int_to_ptr.hbm [resolvable:$true] %s1664_s8 }
  0x1d   : > { %v2378_v7 = vld [vmem:[%s2371_s26 + $0x40] sm:$0xff]  ;;  %1857 = vmatmul.msk.bf16.vlgmr.msra.gmra.mxu0 %vm325_vm0, %v2041_v5  ;;  %1860 = vmatmul.msk.bf16.vlgmr.msra.gmra.mxu1 %vm325_vm0, %v2375_v6  ;;  %v2042_v10 = vld [vmem:[%s2371_s26 + $0x10] sm:$0xff]  ;;  %v2395_v11 = vld [vmem:[%s2371_s26 + $0x28] sm:$0xff]  ;;  %s2792_s17 = scalar_lea.vmem [#allocation2], %s2090_s16  ;;  %s2159_s10 = sshra.s32 %s1665_s8, 4  ;;  %s2160_s10 = int_to_ptr.hbm [resolvable:$true] %s2159_s10 }
  0x1e   : > { %1864 = vmatmul.msk.bf16.vlgmr.msra.gmra.mxu3 %vm325_vm0, %v2378_v7  ;;  %1863 = vmatmul.msk.bf16.vlgmr.msra.gmra.mxu2 %vm325_vm0, %v2384_v8  ;;  %v2398_v12 = vld [vmem:[%s2371_s26 + $0x48] sm:$0xff]  ;;  %v2043_v16 = vld [vmem:[%s2371_s26 + $0x18] sm:$0xff]  ;;  %v2417_v17 = vld [vmem:[%s2371_s26 + $0x30] sm:$0xff]  ;;  %s1662_s7 = sshll.u32 %s2792_s17, 4  ;;  %s2161_s11 = scalar_lea.hbm %s2160_s10, 80  ;;  %s1663_s7 = int_to_ptr.vmem [resolvable:$true] %s1662_s7 }
  0x1f   : > { %1163 = vmatpush.bf16.msra.mxu2 %v2067_v9  ;;  %1261 = vmatpush.bf16.msra.mxu3 %v2068_v13  ;;  %v2420_v18 = vld [vmem:[%s2371_s26 + $0x50] sm:$0xff]  ;;  %v2423_v19 = vld [vmem:[%s2371_s26 + $0x8] sm:$0xff]  ;;  %v2071_v20 = vld [vmem:[%s2371_s26] sm:$0xff]   ;;  %p2162_p11 = scmp.ne.s32.totalorder %s2160_s10, %s2161_s11  ;;  %p2166_p0 = scmp.lt.s32.totalorder %s2160_s10, %s3032_s3 }
  0x20   : > { %1019 = vmatpush.bf16.msra.mxu1 %v2066_v14  ;;  %1359 = vmatpush.bf16.msra.mxu0 %v2069_v15  ;;  %v674_v21 = vshll.u32 %v2423_v19, 16  ;;  %v2433_v22 = vld [vmem:[%s2371_s26 + $0x10] sm:$0xff]  ;;  %v669_v23 = vshll.u32 %v2071_v20, 16  ;;  %v678_v25 = vshrl.u32 %v2423_v19, 16  ;;  %v667_v27 = vshrl.u32 %v2071_v20, 16  ;;  %v2040_v32 = vld [vmem:[%s2371_s26] sm:$0xff]  ;;  %p2167_p1 = scmp.lt.s32.totalorder %s2165_s15, %s2161_s11 }
  0x21   : > { %v682_v26 = vshll.u32 %v2433_v22, 16  ;;  %v2445_v35 = vld [vmem:[%s2371_s26 + $0x18] sm:$0xff]  ;;  %v686_v36 = vshrl.u32 %v2433_v22, 16  ;;  %v2459_v41 = vld [vmem:[%s2371_s26 + $0x20] sm:$0xff]  ;;  %v2474_v47 = vld [vmem:[%s2371_s26 + $0x28] sm:$0xff]  ;;  %p2163_p12 = pnand %p2162_p11, %p2341_p5 }
  0x22   : > { %v676_v24 = vrot.slane %v674_v21, 1  ;;  %v671_v28 = vrot.slane %v669_v23, 1  ;;  %v690_v37 = vshll.u32 %v2445_v35, 16  ;;  %v694_v42 = vshrl.u32 %v2445_v35, 16  ;;  %v2489_v53 = vld [vmem:[%s2371_s26 + $0x30] sm:$0xff]  ;;  %v2505_v59 = vld [vmem:[%s2371_s26 + $0x38] sm:$0xff]  ;;  %p2168_p2 = por %p2167_p1, %p2166_p0 }
  0x23   : > { %v684_v30 = vrot.slane %v682_v26, 1  ;;  %v698_v43 = vshll.u32 %v2459_v41, 16  ;;  %v702_v48 = vshrl.u32 %v2459_v41, 16  ;;  %v706_v49 = vshll.u32 %v2474_v47, 16  ;;  %v2525_v3 = vld [vmem:[%s2371_s26 + $0x40] sm:$0xff]  ;;  %p2164_p13 = pneg %p2163_p12 }
  0x24   : > { %v680_v29 = vor.u32 %v678_v25, %v676_v24  ;;  %v672_v31 = vor.u32 %v671_v28, %v667_v27  ;;  %v692_v39 = vrot.slane %v690_v37, 1  ;;  %v710_v54 = vshrl.u32 %v2474_v47, 16  ;;  %v2051_v37 = vld [vmem:[%s2371_s26 + $0x58] sm:$0xff] }
  0x25   : > { %v688_v38 = vor.u32 %v686_v36, %v684_v30  ;;  %v700_v45 = vrot.slane %v698_v43, 1  ;;  %v708_v51 = vrot.slane %v706_v49, 1  ;;  %v714_v55 = vshll.u32 %v2489_v53, 16  ;;  %v2085_v43 = vld [vmem:[%s2371_s26] sm:$0xe]  ;;  %p2169_p3 = pnand %p2168_p2, %p2164_p13 }
  0x26   : > { %v685_v33 = vsel %vm665_vm1, %v680_v29, %v684_v30  ;;  %v677_v34 = vsel %vm665_vm1, %v672_v31, %v676_v24  ;;  %v696_v44 = vor.u32 %v694_v42, %v692_v39  ;;  %v718_v60 = vshrl.u32 %v2489_v53, 16  ;;  %v2557_v24 = vld [vmem:[%s2371_s26 + $0x48] sm:$0xff]  ;;  %v2084_v42 = vld [vmem:[%s2371_s26] sm:$0xf0] }
  0x27   : > { %v2452_v40 = vsel %vm665_vm1, %v688_v38, %v692_v39  ;;  %v704_v50 = vor.u32 %v702_v48, %v700_v45  ;;  %v712_v56 = vor.u32 %v710_v54, %v708_v51  ;;  %v716_v57 = vrot.slane %v714_v55, 1  ;;  %v2586_v38 = vld [vmem:[%s2371_s26 + $0x50] sm:$0xff]   ;;  %v2600_v55 = vld [vmem:[%s2371_s26 + $0x58] sm:$0xff]  }
  0x28   : > { %v2466_v46 = vsel %vm665_vm1, %v696_v44, %v700_v45  ;;  %v722_v61 = vshll.u32 %v2505_v59, 16  ;;  %v726_v9 = vshrl.u32 %v2505_v59, 16  ;;  %v738_v28 = vshll.u32 %v2557_v24, 16 }
  0x29   : > { %v2481_v52 = vsel %vm665_vm1, %v704_v50, %v708_v51  ;;  %v2496_v58 = vsel %vm665_vm1, %v712_v56, %v716_v57  ;;  %v720_v62 = vor.u32 %v718_v60, %v716_v57  ;;  %v875_v48 = vshll.u32 %v2586_v38, 16 }
  0x2a   : > { %v724_v63 = vrot.slane %v722_v61, 1  ;;  %v740_v31 = vrot.slane %v738_v28, 1  ;;  %v2086_v50 = vor.u32 %v2085_v43, %v2084_v42  ;;  %v1100_v57 = vrot.slane %v2423_v19, 1 }
  0x2b   : > { %v877_v54 = vrot.slane %v875_v48, 1  ;;  %v879_v43 = vshrl.u32 %v2586_v38, 16 }
  0x2c   : > { %v2516_v2 = vsel %vm665_vm1, %v720_v62, %v724_v63  ;;  %v728_v13 = vor.u32 %v726_v9, %v724_v63  ;;  %v1099_v56 = vrot.slane %v2086_v50, 1  ;;  %v2080_v9 = vunpack.c.l.b16 %v2600_v55 }
  0x2d   : > { %1858 = vmatmul.msk.bf16.gmra.mxu0 %vm325_vm0, %v2042_v10  ;;  %1861 = vmatmul.msk.bf16.gmra.mxu1 %vm325_vm0, %v2395_v11 }
  0x2e   : > { %1865 = vmatmul.msk.bf16.gmra.mxu3 %vm325_vm0, %v2398_v12  ;;  %1895 = vmatmul.msk.bf16.vlgmr.msrb.gmra.mxu2 %vm325_vm0, %v2042_v10  ;;  %v2618_v28 = vpack.c.b16 %v2080_v9, %v2080_v9 }
  0x30   : > { %3039 = vst [vmem:[#allocation10_spill] sm:$0xff] %v2618_v28 }
  0x3d   : > { %1859 = vmatmul.msk.bf16.gmra.mxu0 %vm325_vm0, %v2043_v16  ;;  %1862 = vmatmul.msk.bf16.gmra.mxu1 %vm325_vm0, %v2417_v17 }
  0x3e   : > { %1866 = vmatmul.msk.bf16.gmra.mxu3 %vm325_vm0, %v2420_v18  ;;  %1896 = vmatmul.msk.bf16.gmra.mxu2 %vm325_vm0, %v2043_v16 }
  0x4d   : > { %1875 = vmatmul.msk.bf16.vlgmr.msrb.gmra.mxu1 %vm325_vm0, %v2040_v32  ;;  %1963 = vmatmul.msk.bf16.vlgmr.msrb.gmra.mxu0 %vm325_vm0, %v685_v33 }
  0x4e   : > { %1947 = vmatmul.msk.bf16.vlgmr.msrb.gmra.mxu3 %vm325_vm0, %v677_v34  ;;  %1897 = vmatmul.msk.bf16.gmra.mxu2 %vm325_vm0, %v2375_v6 }
  0x5d   : > { %1876 = vmatmul.msk.bf16.gmra.mxu1 %vm325_vm0, %v2041_v5  ;;  %1964 = vmatmul.msk.bf16.gmra.mxu0 %vm325_vm0, %v2452_v40 }
  0x5e   : > { %1948 = vmatmul.msk.bf16.gmra.mxu3 %vm325_vm0, %v685_v33  ;;  %1898 = vmatmul.msk.bf16.gmra.mxu2 %vm325_vm0, %v2395_v11 }
  0x6d   : > { %1877 = vmatmul.msk.bf16.gmra.mxu1 %vm325_vm0, %v2042_v10  ;;  %1965 = vmatmul.msk.bf16.gmra.mxu0 %vm325_vm0, %v2466_v46  ;;  %v730_v10 = vshll.u32 %v2525_v3, 16 }
  0x6e   : > { %1949 = vmatmul.msk.bf16.gmra.mxu3 %vm325_vm0, %v2452_v40  ;;  %1899 = vmatmul.msk.bf16.gmra.mxu2 %vm325_vm0, %v2417_v17 }
  0x6f   : > { %v732_v14 = vrot.slane %v730_v10, 1 }
  0x71   : > { %v2546_v21 = vsel %vm665_vm1, %v728_v13, %v732_v14  ;;  %v2076_v13 = vunpack.c.l.b16 %v2586_v38 }
  0x7d   : > { %1878 = vmatmul.msk.bf16.gmra.mxu1 %vm325_vm0, %v2043_v16  ;;  %1966 = vmatmul.msk.bf16.gmra.mxu0 %vm325_vm0, %v2481_v52 }
  0x7e   : > { %1950 = vmatmul.msk.bf16.gmra.mxu3 %vm325_vm0, %v2466_v46  ;;  %1900 = vmatmul.msk.bf16.gmra.mxu2 %vm325_vm0, %v2384_v8 }
  0x8d   : > { %1879 = vmatmul.msk.bf16.gmra.mxu1 %vm325_vm0, %v2375_v6  ;;  %1967 = vmatmul.msk.bf16.gmra.mxu0 %vm325_vm0, %v2496_v58 }
  0x8e   : > { %1951 = vmatmul.msk.bf16.gmra.mxu3 %vm325_vm0, %v2481_v52  ;;  %1901 = vmatmul.msk.bf16.gmra.mxu2 %vm325_vm0, %v2378_v7 }
  0x9a   : > { %v2511_v0 = vpop.f32.mrf.mxu0  ;;  %v2513_v1 = vpop.f32.mrf.mxu1 }
  0x9d   : > { %1880 = vmatmul.msk.bf16.gmra.mxu1 %vm325_vm0, %v2395_v11  ;;  %1968 = vmatmul.msk.bf16.gmra.mxu0 %vm325_vm0, %v2516_v2 }
  0x9e   : > { %1952 = vmatmul.msk.bf16.gmra.mxu3 %vm325_vm0, %v2496_v58  ;;  %1902 = vmatmul.msk.bf16.gmra.mxu2 %vm325_vm0, %v2398_v12 }
  0xa1   : > { %v2529_v4 = vpop.f32.mrf.mxu3  ;;  %v2537_v11 = vpop.f32.mrf.mxu2 }
  0xa2   : > { %v2531_v5 = vpop.f32.mrf.mxu0  ;;  %v2533_v6 = vpop.f32.mrf.mxu1 }
  0xa9   : > { %v2539_v15 = vpop.f32.mrf.mxu3  ;;  %v2548_v23 = vpop.f32.mrf.mxu2 }
  0xaa   : > { %v2541_v16 = vpop.f32.mrf.mxu0  ;;  %v2543_v20 = vpop.f32.mrf.mxu1 }
  0xad   : > { %1881 = vmatmul.msk.bf16.gmra.mxu1 %vm325_vm0, %v2417_v17  ;;  %1969 = vmatmul.msk.bf16.gmra.mxu0 %vm325_vm0, %v2546_v21  ;;  %v734_v17 = vshrl.u32 %v2525_v3, 16 }
  0xae   : > { %1953 = vmatmul.msk.bf16.gmra.mxu3 %vm325_vm0, %v2516_v2  ;;  %1903 = vmatmul.msk.bf16.gmra.mxu2 %vm325_vm0, %v2420_v18 }
  0xaf   : > { %v736_v30 = vor.u32 %v734_v17, %v732_v14  ;;  %v1101_v17 = vsel %vm1098_vm2, %v1099_v56, %v1100_v57 }
  0xb1   : > { %v2561_v25 = vpop.f32.mrf.mxu3  ;;  %v514_v29 = vpop.f32.mrf.mxu2  ;;  %v2576_v34 = vsel %vm665_vm1, %v736_v30, %v740_v31  ;;  %v2620_v30 = vpack.c.b16 %v2076_v13, %v2076_v13 }
  0xb2   : > { %v2563_v26 = vpop.f32.mrf.mxu0  ;;  %v2565_v27 = vpop.f32.mrf.mxu1 }
  0xb9   : > { %v2569_v32 = vpop.f32.mrf.mxu3  ;;  %v516_v36 = vpop.f32.mrf.mxu2 }
  0xba   : > { %v2571_v33 = vpop.f32.mrf.mxu0  ;;  %v2573_v18 = vpop.f32.mrf.mxu1 }
  0xbd   : > { %1882 = vmatmul.msk.bf16.gmra.mxu1 %vm325_vm0, %v2384_v8  ;;  %1970 = vmatmul.msk.bf16.gmra.mxu0 %vm325_vm0, %v2576_v34  ;;  %v742_v8 = vshrl.u32 %v2557_v24, 16 }
  0xbe   : > { %1954 = vmatmul.msk.bf16.gmra.mxu3 %vm325_vm0, %v2546_v21  ;;  %1904 = vmatmul.msk.bf16.gmra.mxu2 %vm325_vm0, %v2051_v37 }
  0xbf   : > { %v744_v51 = vor.u32 %v742_v8, %v740_v31 }
  0xc1   : > { %v2589_v39 = vpop.f32.mrf.mxu3  ;;  %v519_v49 = vpop.f32.mrf.mxu2  ;;  %v2606_v63 = vsel %vm665_vm1, %v744_v51, %v877_v54 }
  0xc2   : > { %v2593_v44 = vpop.f32.mrf.mxu0  ;;  %v2595_v45 = vpop.f32.mrf.mxu1 }
  0xc9   : > { %v2603_v60 = vpop.f32.mrf.mxu3  ;;  %v521_v14 = vpop.f32.mrf.mxu2 }
  0xca   : > { %3038 = vst [vmem:[#allocation9_spill] sm:$0xff] %v2603_v60  ;;  %v438_v61 = vpop.f32.mrf.mxu1  ;;  %v908_v62 = vpop.f32.mrf.mxu0 }
  0xcb   : > { %v439_v10 = vadd.f32 %v438_v61, %v2511_v0  ;;  %v2629_v61 = vor.u32 %v879_v43, %v877_v54 }
  0xcd   : > { %1883 = vmatmul.msk.bf16.gmra.mxu1 %vm325_vm0, %v2378_v7  ;;  %1971 = vmatmul.msk.bf16.gmra.mxu0 %vm325_vm0, %v2606_v63  ;;  %v564_v19 = vadd.f32 %v514_v29, %v439_v10  ;;  %v883_v7 = vshll.u32 %v2618_v28, 16  ;;  %v746_v29 = vshll.u32 %v2620_v30, 16  ;;  %v1102_v28 = vrot.slane %v2433_v22, 1 }
  0xce   : > { %1955 = vmatmul.msk.bf16.gmra.mxu3 %vm325_vm0, %v2576_v34  ;;  %1995 = vmatmul.msk.bf16.vlgmr.msra.gmra.mxu2 %vm325_vm0, %v1101_v17 }
  0xcf   : > { %v885_v9 = vrot.slane %v883_v7, 1  ;;  %v748_v10 = vrot.slane %v746_v29, 1  ;;  %v1103_v54 = vsel %vm1098_vm2, %v1100_v57, %v1102_v28 }
  0xd1   : > { %v795_v0 = vpop.f32.mrf.mxu3  ;;  %v524_v48 = vpop.f32.mrf.mxu2  ;;  %v886_v60 = vsel %vm665_vm1, %v2629_v61, %v885_v9 }
  0xd2   : > { %v845_v31 = vadd.f32 %v795_v0, %v564_v19  ;;  %v440_v37 = vpop.f32.mrf.mxu1  ;;  %v910_v42 = vpop.f32.mrf.mxu0 }
  0xd3   : > { %v441_v8 = vadd.f32 %v440_v37, %v2531_v5  ;;  %v749_v37 = vsel %vm665_vm1, %v744_v51, %v748_v10 }
  0xd4   : > { %v2627_v50 = vadd.f32 %v908_v62, %v845_v31 }
  0xd5   : > { %v565_v56 = vadd.f32 %v516_v36, %v441_v8 }
  0xd9   : > { %v797_v13 = vpop.f32.mrf.mxu3  ;;  %v526_v62 = vpop.f32.mrf.mxu2 }
  0xda   : > { %v846_v17 = vadd.f32 %v797_v13, %v565_v56  ;;  %v443_v19 = vpop.f32.mrf.mxu1  ;;  %v913_v0 = vpop.f32.mrf.mxu0 }
  0xdb   : > { %v444_v5 = vadd.f32 %v443_v19, %v2541_v16 }
  0xdc   : > { %v2636_v31 = vadd.f32 %v910_v42, %v846_v17 }
  0xdd   : > { %1884 = vmatmul.msk.bf16.gmra.mxu1 %vm325_vm0, %v2398_v12  ;;  %1972 = vmatmul.msk.bf16.gmra.mxu0 %vm325_vm0, %v886_v60  ;;  %v566_v36 = vadd.f32 %v519_v49, %v444_v5  ;;  %v1104_v12 = vrot.slane %v2445_v35, 1 }
  0xde   : > { %1956 = vmatmul.msk.bf16.gmra.mxu3 %vm325_vm0, %v749_v37  ;;  %1996 = vmatmul.msk.bf16.gmra.mxu2 %vm325_vm0, %v1103_v54 }
  0xdf   : > { %v1105_v57 = vsel %vm1098_vm2, %v1102_v28, %v1104_v12 }
  0xe1   : > { %v800_v22 = vpop.f32.mrf.mxu3  ;;  %v529_v42 = vpop.f32.mrf.mxu2 }
  0xe2   : > { %v847_v43 = vadd.f32 %v800_v22, %v566_v36  ;;  %v445_v16 = vpop.f32.mrf.mxu1  ;;  %v915_v7 = vpop.f32.mrf.mxu0  ;;  %v1106_v36 = vrot.slane %v2459_v41, 1 }
  0xe3   : > { %v446_v51 = vadd.f32 %v445_v16, %v2563_v26 }
  0xe4   : > { %v2645_v8 = vadd.f32 %v913_v0, %v847_v43 }
  0xe5   : > { %v567_v29 = vadd.f32 %v521_v14, %v446_v51 }
  0xe9   : > { %v802_v60 = vpop.f32.mrf.mxu3  ;;  %v531_v13 = vpop.f32.mrf.mxu2 }
  0xea   : > { %v848_v49 = vadd.f32 %v802_v60, %v567_v29  ;;  %v448_v56 = vpop.f32.mrf.mxu1  ;;  %v918_v9 = vpop.f32.mrf.mxu0 }
  0xeb   : > { %v449_v10 = vadd.f32 %v448_v56, %v2571_v33 }
  0xec   : > { %v2650_v17 = vadd.f32 %v915_v7, %v848_v49 }
  0xed   : > { %1979 = vmatmul.msk.bf16.vlgmr.msra.gmra.mxu1 %vm325_vm0, %v2452_v40  ;;  %2027 = vmatmul.msk.bf16.vlgmr.msra.gmra.mxu0 %vm325_vm0, %v1105_v57  ;;  %v568_v26 = vadd.f32 %v524_v48, %v449_v10 }
  0xee   : > { %2011 = vmatmul.msk.bf16.vlgmr.msra.gmra.mxu3 %vm325_vm0, %v1103_v54  ;;  %1997 = vmatmul.msk.bf16.gmra.mxu2 %vm325_vm0, %v1105_v57  ;;  %v1107_v54 = vsel %vm1098_vm2, %v1104_v12, %v1106_v36 }
  0xf1   : > { %v805_v35 = vpop.f32.mrf.mxu3  ;;  %v534_v33 = vpop.f32.mrf.mxu2 }
  0xf2   : > { %v849_v14 = vadd.f32 %v805_v35, %v568_v26  ;;  %v450_v19 = vpop.f32.mrf.mxu1  ;;  %v920_v0 = vpop.f32.mrf.mxu0 }
  0xf3   : > { %v451_v28 = vadd.f32 %v450_v19, %v2593_v44 }
  0xf4   : > { %v2658_v5 = vadd.f32 %v918_v9, %v849_v14  ;;  %v1108_v9 = vrot.slane %v2474_v47, 1 }
  0xf5   : > { %v569_v37 = vadd.f32 %v526_v62, %v451_v28 }
  0xf9   : > { %v807_v40 = vpop.f32.mrf.mxu3  ;;  %v536_v7 = vpop.f32.mrf.mxu2 }
  0xfa   : > { %v850_v22 = vadd.f32 %v807_v40, %v569_v37  ;;  %v453_v43 = vpop.f32.mrf.mxu1  ;;  %v923_v48 = vpop.f32.mrf.mxu0 }
  0xfb   : > { %v454_v16 = vadd.f32 %v453_v43, %v2513_v1 }
  0xfc   : > { %v2663_v51 = vadd.f32 %v920_v0, %v850_v22  ;;  %v1110_v22 = vrot.slane %v2489_v53, 1 }
  0xfd   : > { %1980 = vmatmul.msk.bf16.gmra.mxu1 %vm325_vm0, %v2466_v46  ;;  %2028 = vmatmul.msk.bf16.gmra.mxu0 %vm325_vm0, %v1107_v54  ;;  %v570_v44 = vadd.f32 %v529_v42, %v454_v16 }
  0xfe   : > { %2012 = vmatmul.msk.bf16.gmra.mxu3 %vm325_vm0, %v1105_v57  ;;  %1998 = vmatmul.msk.bf16.gmra.mxu2 %vm325_vm0, %v1107_v54  ;;  %v1109_v57 = vsel %vm1098_vm2, %v1106_v36, %v1108_v9 }
 0x101   : > { %v810_v41 = vpop.f32.mrf.mxu3  ;;  %v539_v1 = vpop.f32.mrf.mxu2 }
 0x102   : > { %v851_v62 = vadd.f32 %v810_v41, %v570_v44  ;;  %v455_v29 = vpop.f32.mrf.mxu1  ;;  %v925_v60 = vpop.f32.mrf.mxu0 }
 0x103   : > { %v456_v12 = vadd.f32 %v455_v29, %v2533_v6 }
 0x104   : > { %v2671_v49 = vadd.f32 %v923_v48, %v851_v62 }
 0x105   : > { %v571_v56 = vadd.f32 %v531_v13, %v456_v12 }
 0x109   : > { %v812_v46 = vpop.f32.mrf.mxu3  ;;  %v541_v14 = vpop.f32.mrf.mxu2 }
 0x10a   : > { %v852_v10 = vadd.f32 %v812_v46, %v571_v56  ;;  %v458_v26 = vpop.f32.mrf.mxu1  ;;  %v928_v42 = vpop.f32.mrf.mxu0 }
 0x10b   : > { %v459_v35 = vadd.f32 %v458_v26, %v2543_v20 }
 0x10c   : > { %v2676_v19 = vadd.f32 %v925_v60, %v852_v10 }
 0x10d   : > { %1981 = vmatmul.msk.bf16.gmra.mxu1 %vm325_vm0, %v2481_v52  ;;  %2029 = vmatmul.msk.bf16.gmra.mxu0 %vm325_vm0, %v1109_v57  ;;  %v572_v6 = vadd.f32 %v534_v33, %v459_v35 }
 0x10e   : > { %2013 = vmatmul.msk.bf16.gmra.mxu3 %vm325_vm0, %v1107_v54  ;;  %1999 = vmatmul.msk.bf16.gmra.mxu2 %vm325_vm0, %v1109_v57  ;;  %v1111_v54 = vsel %vm1098_vm2, %v1108_v9, %v1110_v22  ;;  %v1112_v9 = vrot.slane %v2505_v59, 1 }
 0x110   : > { %v1113_v26 = vsel %vm1098_vm2, %v1110_v22, %v1112_v9 }
 0x111   : > { %v815_v47 = vpop.f32.mrf.mxu3  ;;  %v544_v20 = vpop.f32.mrf.mxu2 }
 0x112   : > { %v853_v13 = vadd.f32 %v815_v47, %v572_v6  ;;  %v460_v0 = vpop.f32.mrf.mxu1  ;;  %v930_v28 = vpop.f32.mrf.mxu0 }
 0x113   : > { %v461_v37 = vadd.f32 %v460_v0, %v2565_v27 }
 0x114   : > { %v2684_v36 = vadd.f32 %v928_v42, %v853_v13 }
 0x115   : > { %v573_v40 = vadd.f32 %v536_v7, %v461_v37  ;;  %v1114_v37 = vrot.slane %v2525_v3, 1 }
 0x119   : > { %v817_v52 = vpop.f32.mrf.mxu3  ;;  %v546_v44 = vpop.f32.mrf.mxu2 }
 0x11a   : > { %v854_v43 = vadd.f32 %v817_v52, %v573_v40  ;;  %v463_v48 = vpop.f32.mrf.mxu1  ;;  %v933_v33 = vpop.f32.mrf.mxu0  ;;  %v1115_v52 = vsel %vm1098_vm2, %v1112_v9, %v1114_v37 }
 0x11b   : > { %v464_v16 = vadd.f32 %v463_v48, %v2573_v18 }
 0x11c   : > { %v2689_v41 = vadd.f32 %v930_v28, %v854_v43 }
 0x11d   : > { %1982 = vmatmul.msk.bf16.gmra.mxu1 %vm325_vm0, %v2496_v58  ;;  %2030 = vmatmul.msk.bf16.gmra.mxu0 %vm325_vm0, %v1111_v54  ;;  %v574_v27 = vadd.f32 %v539_v1, %v464_v16 }
 0x11e   : > { %2014 = vmatmul.msk.bf16.gmra.mxu3 %vm325_vm0, %v1109_v57  ;;  %2000 = vmatmul.msk.bf16.gmra.mxu2 %vm325_vm0, %v1111_v54 }
 0x121   : > { %v820_v53 = vpop.f32.mrf.mxu3  ;;  %v549_v18 = vpop.f32.mrf.mxu2 }
 0x122   : > { %v855_v7 = vadd.f32 %v820_v53, %v574_v27  ;;  %v465_v62 = vpop.f32.mrf.mxu1  ;;  %v935_v29 = vpop.f32.mrf.mxu0 }
 0x123   : > { %v466_v60 = vadd.f32 %v465_v62, %v2595_v45  ;;  %v1116_v62 = vrot.slane %v2557_v24, 1 }
 0x124   : > { %v2697_v12 = vadd.f32 %v933_v33, %v855_v7 }
 0x125   : > { %v575_v56 = vadd.f32 %v541_v14, %v466_v60 }
 0x129   : > { %v822_v58 = vpop.f32.mrf.mxu3  ;;  %v551_v57 = vpop.f32.mrf.mxu2 }
 0x12a   : > { %v856_v46 = vadd.f32 %v822_v58, %v575_v56  ;;  %v468_v10 = vpop.f32.mrf.mxu1  ;;  %v938_v1 = vpop.f32.mrf.mxu0  ;;  %v1117_v56 = vsel %vm1098_vm2, %v1114_v37, %v1116_v62 }
 0x12b   : > { %v469_v42 = vadd.f32 %v468_v10, %v2537_v11 }
 0x12c   : > { %v2702_v35 = vadd.f32 %v935_v29, %v856_v46 }
 0x12d   : > { %1983 = vmatmul.msk.bf16.gmra.mxu1 %vm325_vm0, %v2516_v2  ;;  %2031 = vmatmul.msk.bf16.gmra.mxu0 %vm325_vm0, %v1113_v26  ;;  %v576_v45 = vadd.f32 %v544_v20, %v469_v42 }
 0x12e   : > { %2015 = vmatmul.msk.bf16.gmra.mxu3 %vm325_vm0, %v1111_v54  ;;  %2001 = vmatmul.msk.bf16.gmra.mxu2 %vm325_vm0, %v1113_v26 }
 0x131   : > { %v825_v59 = vpop.f32.mrf.mxu3  ;;  %v554_v11 = vpop.f32.mrf.mxu2 }
 0x132   : > { %v857_v14 = vadd.f32 %v825_v59, %v576_v45  ;;  %v470_v6 = vpop.f32.mrf.mxu1  ;;  %v940_v47 = vpop.f32.mrf.mxu0  ;;  %v2739_v59 = vrot.slane %v2586_v38, 1 }
 0x133   : > { %v471_v13 = vadd.f32 %v470_v6, %v2548_v23 }
 0x134   : > { %v2710_v0 = vadd.f32 %v938_v1, %v857_v14 }
 0x135   : > { %v577_v28 = vadd.f32 %v546_v44, %v471_v13 }
 0x139   : > { %v827_v2 = vpop.f32.mrf.mxu3  ;;  %v556_v48 = vpop.f32.mrf.mxu2 }
 0x13a   : > { %v858_v40 = vadd.f32 %v827_v2, %v577_v28  ;;  %v473_v22 = vpop.f32.mrf.mxu1  ;;  %v943_v20 = vpop.f32.mrf.mxu0 }
 0x13b   : > { %v474_v43 = vadd.f32 %v473_v22, %v2529_v4 }
 0x13c   : > { %v2715_v33 = vadd.f32 %v940_v47, %v858_v40 }
 0x13d   : > { %1984 = vmatmul.msk.bf16.gmra.mxu1 %vm325_vm0, %v2546_v21  ;;  %2032 = vmatmul.msk.bf16.gmra.mxu0 %vm325_vm0, %v1115_v52  ;;  %v578_v23 = vadd.f32 %v549_v18, %v474_v43 }
 0x13e   : > { %2016 = vmatmul.msk.bf16.gmra.mxu3 %vm325_vm0, %v1113_v26  ;;  %2002 = vmatmul.msk.bf16.gmra.mxu2 %vm325_vm0, %v1115_v52 }
 0x141   : > { %v830_v3 = vpop.f32.mrf.mxu3  ;;  %v559_v4 = vpop.f32.mrf.mxu2 }
 0x142   : > { %v859_v54 = vadd.f32 %v830_v3, %v578_v23  ;;  %v475_v16 = vpop.f32.mrf.mxu1  ;;  %v945_v44 = vpop.f32.mrf.mxu0 }
 0x143   : > { %v476_v27 = vadd.f32 %v475_v16, %v2539_v15  ;;  %v608_v16 = vld [vmem:[%s2371_s26 + $0x60] sm:$0x1] }
 0x144   : > { %v2723_v53 = vadd.f32 %v943_v20, %v859_v54  ;;  %v988_v20 = vshll.u32 %v2600_v55, 16  ;;  %v1336_v54 = vrot.slane %v2600_v55, 1 }
 0x145   : > { %v579_v7 = vadd.f32 %v551_v57, %v476_v27 }
 0x146   : > { %v990_v3 = vrot.slane %v988_v20, 1 }
 0x149   : > { %v832_v21 = vpop.f32.mrf.mxu3  ;;  %v561_v58 = vpop.f32.mrf.mxu2 }
 0x14a   : > { %v860_v29 = vadd.f32 %v832_v21, %v579_v7  ;;  %v478_v60 = vpop.f32.mrf.mxu1  ;;  %v948_v18 = vpop.f32.mrf.mxu0  ;;  %v1337_v21 = vsel %vm1098_vm2, %v2739_v59, %v1336_v54 }
 0x14b   : > { %v479_v9 = vadd.f32 %v478_v60, %v2561_v25 }
 0x14c   : > { %v2728_v46 = vadd.f32 %v945_v44, %v860_v29  ;;  %v984_v29 = vunpack.c.l.b16 %v608_v16 }
 0x14d   : > { %1985 = vmatmul.msk.bf16.gmra.mxu1 %vm325_vm0, %v2576_v34  ;;  %2033 = vmatmul.msk.bf16.gmra.mxu0 %vm325_vm0, %v1117_v56  ;;  %v580_v15 = vadd.f32 %v554_v11, %v479_v9  ;;  %v1118_v34 = vrot.slane %v2620_v30, 1  ;;  %v1239_v11 = vsel %vm1098_vm2, %v1116_v62, %v2739_v59 }
 0x14e   : > { %2017 = vmatmul.msk.bf16.gmra.mxu3 %vm325_vm0, %v1115_v52  ;;  %2003 = vmatmul.msk.bf16.gmra.mxu2 %vm325_vm0, %v1117_v56  ;;  %v3040_v52 = vld [vmem:[#allocation9_spill] sm:$0xff]  ;;  %v986_v9 = vpack.c.b16 %v984_v29, %v984_v29 }
 0x151   : > { %v835_v24 = vpop.f32.mrf.mxu3  ;;  %v1165_v25 = vpop.f32.mrf.mxu2 }
 0x152   : > { %v861_v10 = vadd.f32 %v835_v24, %v580_v15  ;;  %v480_v1 = vpop.f32.mrf.mxu1  ;;  %v950_v26 = vpop.f32.mrf.mxu0  ;;  %v1496_v15 = vlaneseq }
 0x153   : > { %v481_v42 = vadd.f32 %v480_v1, %v2569_v32  ;;  %v1119_v32 = vsel %vm1098_vm2, %v1116_v62, %v1118_v34  ;;  %v991_v62 = vsel %vm665_vm1, %v2629_v61, %v990_v3 }
 0x154   : > { %v2736_v57 = vadd.f32 %v948_v18, %v861_v10 }
 0x155   : > { %v581_v45 = vadd.f32 %v556_v48, %v481_v42  ;;  %v996_v42 = vshll.u32 %v986_v9, 16 }
 0x159   : > { %v837_v14 = vpop.f32.mrf.mxu3  ;;  %v1167_v37 = vpop.f32.mrf.mxu2 }
 0x15a   : > { %v862_v6 = vadd.f32 %v837_v14, %v581_v45  ;;  %v483_v47 = vpop.f32.mrf.mxu1  ;;  %v953_v13 = vpop.f32.mrf.mxu0  ;;  %v1497_v14 = vshrl.u32 %v1496_v15, 7 }
 0x15b   : > { %v484_v28 = vadd.f32 %v483_v47, %v2589_v39 }
 0x15c   : > { %v2746_v2 = vadd.f32 %v950_v26, %v862_v6  ;;  %v992_v26 = vshrl.u32 %v2600_v55, 16  ;;  %v2788_v55 = vadd.s32 8, %v1497_v14 }
 0x15d   : > { %1986 = vmatmul.msk.bf16.gmra.mxu1 %vm325_vm0, %v2606_v63  ;;  %2034 = vmatmul.msk.bf16.gmra.mxu0 %vm325_vm0, %v1239_v11  ;;  %v582_v38 = vadd.f32 %v559_v4, %v484_v28  ;;  %v3041_v28 = vld [vmem:[#allocation10_spill] sm:$0xff] }
 0x15e   : > { %2018 = vmatmul.msk.bf16.gmra.mxu3 %vm325_vm0, %v1117_v56  ;;  %2004 = vmatmul.msk.bf16.gmra.mxu2 %vm325_vm0, %v1119_v32  ;;  %v994_v47 = vor.u32 %v992_v26, %v990_v3  ;;  %v1240_v32 = vrot.slane %v3041_v28, 1  ;;  %vm1500_vm4 = vcmp.lt.s32.totalorder %v2788_v55, 10 }
 0x161   : > { %v840_v30 = vpop.f32.mrf.mxu3  ;;  %v2755_v48 = vpop.f32.mrf.mxu2 }
 0x162   : > { %v863_v40 = vadd.f32 %v840_v30, %v582_v38  ;;  %v485_v22 = vpop.f32.mrf.mxu1  ;;  %v955_v39 = vpop.f32.mrf.mxu0 }
 0x163   : > { %v486_v43 = vadd.f32 %v485_v22, %v3040_v52 }
 0x164   : > { %v2757_v23 = vadd.f32 %v953_v13, %v863_v40  ;;  %v998_v13 = vrot.slane %v996_v42, 1 }
 0x165   : > { %v583_v63 = vadd.f32 %v561_v58, %v486_v43  ;;  %v1241_v43 = vsel %vm1098_vm2, %v2739_v59, %v1240_v32 }
 0x166   : > { %v999_v52 = vsel %vm665_vm1, %v994_v47, %v998_v13 }
 0x169   : > { %v842_v44 = vpop.f32.mrf.mxu3  ;;  %v2765_v60 = vpop.f32.mrf.mxu2 }
 0x16a   : > { %v864_v27 = vadd.f32 %v842_v44, %v583_v63  ;;  %v1021_v4 = vpop.f32.mrf.mxu1  ;;  %v1361_v7 = vpop.f32.mrf.mxu0 }
 0x16b   : > { %v1071_v18 = vadd.f32 %v1021_v4, %v2627_v50  ;;  %v2779_v50 = vld [vmem:[%s3031_s2] ss:$0 sm:$0xff] }
 0x16c   : > { %v2768_v56 = vadd.f32 %v955_v39, %v864_v27 }
 0x16d   : > { %1987 = vmatmul.msk.bf16.gmra.mxu1 %vm325_vm0, %v991_v62  ;;  %2035 = vmatmul.msk.bf16.gmra.mxu0 %vm325_vm0, %v1337_v21  ;;  %v1215_v58 = vadd.f32 %v1165_v25, %v1071_v18 }
 0x16e   : > { %2019 = vmatmul.msk.bf16.gmra.mxu3 %vm325_vm0, %v1239_v11  ;;  %v1338_v11 = vrot.slane %v986_v9, 1 }
 0x171   : > { %v1263_v61 = vpop.f32.mrf.mxu3  ;;  %v2782_v45 = vpop.f32.mrf.mxu2 }
 0x172   : > { %v1313_v24 = vadd.f32 %v1263_v61, %v1215_v58  ;;  %v1023_v10 = vpop.f32.mrf.mxu1  ;;  %v1363_v1 = vpop.f32.mrf.mxu0 }
 0x173   : > { %v1072_v34 = vadd.f32 %v1023_v10, %v2636_v31  ;;  %v1339_v31 = vsel %vm1098_vm2, %v1336_v54, %v1338_v11 }
 0x174   : > { %v1411_v25 = vadd.f32 %v1361_v7, %v1313_v24 }
 0x175   : > { %v1216_v30 = vadd.f32 %v1167_v37, %v1072_v34 }
 0x176   : > { %v1435_v6 = vadd.f32 %v2779_v50, %v1411_v25 }
 0x178   : > { %v1455_v38 = vpack.c.bf16 %v1435_v6, %v1435_v6  ;;  %v1575_v16 = vmul.f32 %v1435_v6, %v1435_v6 }
 0x179   : > { %v1265_v40 = vpop.f32.mrf.mxu3  ;;  %v2798_v63 = vpop.f32.mrf.mxu2 }
 0x17a   : > { %v1314_v22 = vadd.f32 %v1265_v40, %v1216_v30  ;;  %v1026_v39 = vpop.f32.mrf.mxu1  ;;  %v1366_v20 = vpop.f32.mrf.mxu0  ;;  %1476 = vst.msk [vmem:[%s2792_s17] sm:$0xf] %vm1475_vm3, %v1455_v38  ;;  %v1595_v58 = vsel %vm1527_vm5, %v1575_v16, 0.0 }
 0x17b   : > { %v1073_v3 = vadd.f32 %v1026_v39, %v2645_v8  ;;  %v1528_v8 = vsel %vm1527_vm5, %v1435_v6, 0.0 }
 0x17c   : > { %v1412_v37 = vadd.f32 %v1363_v1, %v1314_v22 }
 0x17d   : > { %1988 = vmatmul.msk.bf16.gmra.mxu1 %vm325_vm0, %v999_v52  ;;  %2036 = vmatmul.msk.bf16.gmra.mxu0 %vm325_vm0, %v1339_v31  ;;  %v1217_v27 = vadd.f32 %v2755_v48, %v1073_v3 }
 0x17e   : > { %v1436_v54 = vadd.f32 %v2779_v50, %v1412_v37  ;;  %2020 = vmatmul.msk.bf16.gmra.mxu3 %vm325_vm0, %v1241_v43 }
 0x180   : > { %v1456_v44 = vpack.c.bf16 %v1436_v54, %v1436_v54  ;;  %v1508_v59 = vsel %vm1500_vm4, %v1436_v54, 0.0 }
 0x181   : > { %v1529_v4 = vsel %vm1527_vm5, %v1508_v59, 0.0  ;;  %v1576_v7 = vmul.f32 %v1508_v59, %v1436_v54  ;;  %v1268_v62 = vpop.f32.mrf.mxu3  ;;  %v1180_v10 = vpop.f32.mrf.mxu2 }
 0x182   : > { %v1530_v21 = vadd.f32 %v1529_v4, %v1528_v8  ;;  %v1315_v29 = vadd.f32 %v1268_v62, %v1217_v27  ;;  %v1028_v18 = vpop.f32.mrf.mxu1  ;;  %v1368_v9 = vpop.f32.mrf.mxu0  ;;  %1477 = vst.msk [vmem:[%s2792_s17 + $0x4] sm:$0xf] %vm1475_vm3, %v1456_v44 }
 0x183   : > { %v1596_v61 = vsel %vm1527_vm5, %v1576_v7, 0.0  ;;  %v1074_v48 = vadd.f32 %v1028_v18, %v2650_v17 }
 0x184   : > { %v1597_v15 = vadd.f32 %v1596_v61, %v1595_v58  ;;  %v1413_v24 = vadd.f32 %v1366_v20, %v1315_v29 }
 0x185   : > { %v1218_v34 = vadd.f32 %v2765_v60, %v1074_v48 }
 0x186   : > { %v1437_v1 = vadd.f32 %v2779_v50, %v1413_v24 }
 0x188   : > { %v1457_v26 = vpack.c.bf16 %v1437_v1, %v1437_v1  ;;  %v1531_v42 = vsel %vm1527_vm5, %v1437_v1, 0.0  ;;  %v1577_v25 = vmul.f32 %v1437_v1, %v1437_v1 }
 0x189   : > { %v1532_v14 = vadd.f32 %v1531_v42, %v1530_v21  ;;  %v1270_v6 = vpop.f32.mrf.mxu3  ;;  %v1182_v40 = vpop.f32.mrf.mxu2 }
 0x18a   : > { %v1598_v47 = vsel %vm1527_vm5, %v1577_v25, 0.0  ;;  %v1316_v13 = vadd.f32 %v1270_v6, %v1218_v34  ;;  %v1031_v11 = vpop.f32.mrf.mxu1  ;;  %v1371_v28 = vpop.f32.mrf.mxu0  ;;  %1478 = vst.msk [vmem:[%s2792_s17 + $0x8] sm:$0xf] %vm1475_vm3, %v1457_v26 }
 0x18b   : > { %v1599_v17 = vadd.f32 %v1598_v47, %v1597_v15  ;;  %v1075_v38 = vadd.f32 %v1031_v11, %v2658_v5 }
 0x18c   : > { %v1414_v32 = vadd.f32 %v1368_v9, %v1316_v13 }
 0x18d   : > { %v1219_v39 = vadd.f32 %v2782_v45, %v1075_v38 }
 0x18e   : > { %v1438_v30 = vadd.f32 %v2779_v50, %v1414_v32 }
 0x190   : > { %v1458_v22 = vpack.c.bf16 %v1438_v30, %v1438_v30  ;;  %v1510_v60 = vsel %vm1500_vm4, %v1438_v30, 0.0 }
 0x191   : > { %v1533_v20 = vsel %vm1527_vm5, %v1510_v60, 0.0  ;;  %v1578_v52 = vmul.f32 %v1510_v60, %v1438_v30  ;;  %v1273_v31 = vpop.f32.mrf.mxu3  ;;  %v1185_v29 = vpop.f32.mrf.mxu2 }
 0x192   : > { %v1534_v43 = vadd.f32 %v1533_v20, %v1532_v14  ;;  %v1317_v37 = vadd.f32 %v1273_v31, %v1219_v39  ;;  %v1033_v3 = vpop.f32.mrf.mxu1  ;;  %v1373_v54 = vpop.f32.mrf.mxu0  ;;  %1479 = vst.msk [vmem:[%s2792_s17 + $0xc] sm:$0xf] %vm1475_vm3, %v1458_v22 }
 0x193   : > { %v1600_v5 = vsel %vm1527_vm5, %v1578_v52, 0.0  ;;  %v1076_v59 = vadd.f32 %v1033_v3, %v2663_v51 }
 0x194   : > { %v1601_v16 = vadd.f32 %v1600_v5, %v1599_v17  ;;  %v1415_v44 = vadd.f32 %v1371_v28, %v1317_v37 }
 0x195   : > { %v1220_v7 = vadd.f32 %v2798_v63, %v1076_v59 }
 0x196   : > { %v1439_v27 = vadd.f32 %v2779_v50, %v1415_v44 }
 0x198   : > { %v1459_v45 = vpack.c.bf16 %v1439_v27, %v1439_v27  ;;  %v1535_v8 = vsel %vm1527_vm5, %v1439_v27, 0.0  ;;  %v1579_v4 = vmul.f32 %v1439_v27, %v1439_v27 }
 0x199   : > { %v1536_v62 = vadd.f32 %v1535_v8, %v1534_v43  ;;  %v1275_v21 = vpop.f32.mrf.mxu3 }
 0x19a   : > { %v1602_v18 = vsel %vm1527_vm5, %v1579_v4, 0.0  ;;  %v1318_v9 = vadd.f32 %v1275_v21, %v1220_v7  ;;  %v1036_v58 = vpop.f32.mrf.mxu1  ;;  %v1376_v61 = vpop.f32.mrf.mxu0  ;;  %1480 = vst.msk [vmem:[%s2792_s17 + $0x10] sm:$0xf] %vm1475_vm3, %v1459_v45 }
 0x19b   : > { %v1603_v51 = vadd.f32 %v1602_v18, %v1601_v16  ;;  %v1077_v24 = vadd.f32 %v1036_v58, %v2671_v49  ;;  %v1187_v49 = vpop.f32.mrf.mxu2 }
 0x19c   : > { %v1416_v15 = vadd.f32 %v1373_v54, %v1318_v9 }
 0x19d   : > { %v1221_v26 = vadd.f32 %v1180_v10, %v1077_v24 }
 0x19e   : > { %v1440_v48 = vadd.f32 %v2779_v50, %v1416_v15 }
 0x1a0   : > { %v1460_v1 = vpack.c.bf16 %v1440_v48, %v1440_v48  ;;  %v1512_v63 = vsel %vm1500_vm4, %v1440_v48, 0.0 }
 0x1a1   : > { %v1537_v42 = vsel %vm1527_vm5, %v1512_v63, 0.0  ;;  %v1580_v25 = vmul.f32 %v1512_v63, %v1440_v48  ;;  %v1278_v34 = vpop.f32.mrf.mxu3 }
 0x1a2   : > { %v1538_v14 = vadd.f32 %v1537_v42, %v1536_v62  ;;  %v1319_v6 = vadd.f32 %v1278_v34, %v1221_v26  ;;  %v1038_v47 = vpop.f32.mrf.mxu1  ;;  %v1378_v13 = vpop.f32.mrf.mxu0  ;;  %1481 = vst.msk [vmem:[%s2792_s17 + $0x14] sm:$0xf] %vm1475_vm3, %v1460_v1 }
 0x1a3   : > { %v1604_v11 = vsel %vm1527_vm5, %v1580_v25, 0.0  ;;  %v1078_v32 = vadd.f32 %v1038_v47, %v2676_v19  ;;  %v1190_v5 = vpop.f32.mrf.mxu2 }
 0x1a4   : > { %v1605_v28 = vadd.f32 %v1604_v11, %v1603_v51  ;;  %v1417_v17 = vadd.f32 %v1376_v61, %v1319_v6 }
 0x1a5   : > { %v1222_v60 = vadd.f32 %v1182_v40, %v1078_v32 }
 0x1a6   : > { %v1441_v10 = vadd.f32 %v2779_v50, %v1417_v17 }
 0x1a8   : > { %v1461_v38 = vpack.c.bf16 %v1441_v10, %v1441_v10  ;;  %v1539_v30 = vsel %vm1527_vm5, %v1441_v10, 0.0  ;;  %v1581_v22 = vmul.f32 %v1441_v10, %v1441_v10 }
 0x1a9   : > { %v1540_v39 = vadd.f32 %v1539_v30, %v1538_v14  ;;  %v1280_v20 = vpop.f32.mrf.mxu3 }
 0x1aa   : > { %v1606_v52 = vsel %vm1527_vm5, %v1581_v22, 0.0  ;;  %v1320_v31 = vadd.f32 %v1280_v20, %v1222_v60  ;;  %v1041_v43 = vpop.f32.mrf.mxu1  ;;  %v1381_v37 = vpop.f32.mrf.mxu0  ;;  %1482 = vst.msk [vmem:[%s2792_s17 + $0x18] sm:$0xf] %vm1475_vm3, %v1461_v38 }
 0x1ab   : > { %v1607_v3 = vadd.f32 %v1606_v52, %v1605_v28  ;;  %v1079_v19 = vadd.f32 %v1041_v43, %v2684_v36 }
 0x1ac   : > { %v1418_v54 = vadd.f32 %v1378_v13, %v1320_v31 }
 0x1ad   : > { %v1223_v59 = vadd.f32 %v1185_v29, %v1079_v19  ;;  %v1192_v29 = vpop.f32.mrf.mxu2 }
 0x1ae   : > { %v1442_v16 = vadd.f32 %v2779_v50, %v1418_v54 }
 0x1b0   : > { %v1462_v44 = vpack.c.bf16 %v1442_v16, %v1442_v16  ;;  %v1514_v40 = vsel %vm1500_vm4, %v1442_v16, 0.0 }
 0x1b1   : > { %v1541_v27 = vsel %vm1527_vm5, %v1514_v40, 0.0  ;;  %v1582_v45 = vmul.f32 %v1514_v40, %v1442_v16  ;;  %v1283_v8 = vpop.f32.mrf.mxu3 }
 0x1b2   : > { %v1542_v4 = vadd.f32 %v1541_v27, %v1540_v39  ;;  %v1321_v7 = vadd.f32 %v1283_v8, %v1223_v59  ;;  %v1043_v62 = vpop.f32.mrf.mxu1  ;;  %v1383_v21 = vpop.f32.mrf.mxu0  ;;  %1483 = vst.msk [vmem:[%s2792_s17 + $0x1c] sm:$0xf] %vm1475_vm3, %v1462_v44 }
 0x1b3   : > { %v1608_v36 = vsel %vm1527_vm5, %v1582_v45, 0.0  ;;  %v1080_v58 = vadd.f32 %v1043_v62, %v2689_v41 }
 0x1b4   : > { %v1609_v18 = vadd.f32 %v1608_v36, %v1607_v3  ;;  %v1419_v9 = vadd.f32 %v1381_v37, %v1321_v7 }
 0x1b5   : > { %v1224_v48 = vadd.f32 %v1187_v49, %v1080_v58  ;;  %v1195_v10 = vpop.f32.mrf.mxu2 }
 0x1b6   : > { %v1443_v61 = vadd.f32 %v2779_v50, %v1419_v9 }
 0x1b8   : > { %v1463_v51 = vpack.c.bf16 %v1443_v61, %v1443_v61  ;;  %v1543_v15 = vsel %vm1527_vm5, %v1443_v61, 0.0  ;;  %v1583_v24 = vmul.f32 %v1443_v61, %v1443_v61 }
 0x1b9   : > { %v1544_v1 = vadd.f32 %v1543_v15, %v1542_v4  ;;  %v1285_v63 = vpop.f32.mrf.mxu3 }
 0x1ba   : > { %v1610_v26 = vsel %vm1527_vm5, %v1583_v24, 0.0  ;;  %v1322_v42 = vadd.f32 %v1285_v63, %v1224_v48  ;;  %v1046_v25 = vpop.f32.mrf.mxu1  ;;  %v1386_v34 = vpop.f32.mrf.mxu0  ;;  %1484 = vst.msk [vmem:[%s2792_s17 + $0x20] sm:$0xf] %vm1475_vm3, %v1463_v51 }
 0x1bb   : > { %v1611_v14 = vadd.f32 %v1610_v26, %v1609_v18  ;;  %v1081_v6 = vadd.f32 %v1046_v25, %v2697_v12 }
 0x1bc   : > { %v1420_v41 = vadd.f32 %v1383_v21, %v1322_v42 }
 0x1bd   : > { %v1225_v49 = vadd.f32 %v1190_v5, %v1081_v6  ;;  %v1197_v45 = vpop.f32.mrf.mxu2 }
 0x1be   : > { %v1444_v47 = vadd.f32 %v2779_v50, %v1420_v41 }
 0x1c0   : > { %v1464_v13 = vpack.c.bf16 %v1444_v47, %v1444_v47  ;;  %v1516_v11 = vsel %vm1500_vm4, %v1444_v47, 0.0 }
 0x1c1   : > { %v1545_v28 = vsel %vm1527_vm5, %v1516_v11, 0.0  ;;  %v1584_v17 = vmul.f32 %v1516_v11, %v1444_v47  ;;  %v1288_v32 = vpop.f32.mrf.mxu3 }
 0x1c2   : > { %v1546_v38 = vadd.f32 %v1545_v28, %v1544_v1  ;;  %v1323_v30 = vadd.f32 %v1288_v32, %v1225_v49  ;;  %v1048_v22 = vpop.f32.mrf.mxu1  ;;  %v1388_v60 = vpop.f32.mrf.mxu0  ;;  %1485 = vst.msk [vmem:[%s2792_s17 + $0x24] sm:$0xf] %vm1475_vm3, %v1464_v13 }
 0x1c3   : > { %v1612_v12 = vsel %vm1527_vm5, %v1584_v17, 0.0  ;;  %v1082_v52 = vadd.f32 %v1048_v22, %v2702_v35 }
 0x1c4   : > { %v1613_v39 = vadd.f32 %v1612_v12, %v1611_v14  ;;  %v1421_v20 = vadd.f32 %v1386_v34, %v1323_v30 }
 0x1c5   : > { %v1226_v54 = vadd.f32 %v1192_v29, %v1082_v52  ;;  %v1200_v1 = vpop.f32.mrf.mxu2 }
 0x1c6   : > { %v1445_v31 = vadd.f32 %v2779_v50, %v1421_v20 }
 0x1c8   : > { %v1465_v43 = vpack.c.bf16 %v1445_v31, %v1445_v31  ;;  %v1547_v37 = vsel %vm1527_vm5, %v1445_v31, 0.0  ;;  %v1585_v3 = vmul.f32 %v1445_v31, %v1445_v31 }
 0x1c9   : > { %v1548_v19 = vadd.f32 %v1547_v37, %v1546_v38  ;;  %v1290_v5 = vpop.f32.mrf.mxu3 }
 0x1ca   : > { %v1614_v16 = vsel %vm1527_vm5, %v1585_v3, 0.0  ;;  %v1324_v44 = vadd.f32 %v1290_v5, %v1226_v54  ;;  %v1051_v40 = vpop.f32.mrf.mxu1  ;;  %v1391_v59 = vpop.f32.mrf.mxu0  ;;  %1486 = vst.msk [vmem:[%s2792_s17 + $0x28] sm:$0xf] %vm1475_vm3, %v1465_v43 }
 0x1cb   : > { %v1615_v27 = vadd.f32 %v1614_v16, %v1613_v39  ;;  %v1083_v8 = vadd.f32 %v1051_v40, %v2710_v0 }
 0x1cc   : > { %v1422_v35 = vadd.f32 %v1388_v60, %v1324_v44 }
 0x1cd   : > { %v1227_v21 = vadd.f32 %v1195_v10, %v1083_v8  ;;  %v1202_v32 = vpop.f32.mrf.mxu2 }
 0x1ce   : > { %v1446_v4 = vadd.f32 %v2779_v50, %v1422_v35 }
 0x1d0   : > { %v1466_v7 = vpack.c.bf16 %v1446_v4, %v1446_v4  ;;  %v1518_v62 = vsel %vm1500_vm4, %v1446_v4, 0.0 }
 0x1d1   : > { %v1549_v36 = vsel %vm1527_vm5, %v1518_v62, 0.0  ;;  %v1586_v18 = vmul.f32 %v1518_v62, %v1446_v4  ;;  %v1293_v9 = vpop.f32.mrf.mxu3 }
 0x1d2   : > { %v1550_v58 = vadd.f32 %v1549_v36, %v1548_v19  ;;  %v1325_v61 = vadd.f32 %v1293_v9, %v1227_v21  ;;  %v1053_v29 = vpop.f32.mrf.mxu1  ;;  %v1393_v51 = vpop.f32.mrf.mxu0  ;;  %1487 = vst.msk [vmem:[%s2792_s17 + $0x2c] sm:$0xf] %vm1475_vm3, %v1466_v7 }
 0x1d3   : > { %v1616_v15 = vsel %vm1527_vm5, %v1586_v18, 0.0  ;;  %v1084_v48 = vadd.f32 %v1053_v29, %v2715_v33 }
 0x1d4   : > { %v1617_v0 = vadd.f32 %v1616_v15, %v1615_v27  ;;  %v1423_v24 = vadd.f32 %v1391_v59, %v1325_v61 }
 0x1d5   : > { %v1228_v34 = vadd.f32 %v1197_v45, %v1084_v48  ;;  %v1205_v59 = vpop.f32.mrf.mxu2 }
 0x1d6   : > { %v1447_v63 = vadd.f32 %v2779_v50, %v1423_v24 }
 0x1d8   : > { %v1467_v26 = vpack.c.bf16 %v1447_v63, %v1447_v63  ;;  %v1551_v42 = vsel %vm1527_vm5, %v1447_v63, 0.0  ;;  %v1587_v25 = vmul.f32 %v1447_v63, %v1447_v63 }
 0x1d9   : > { %v1552_v14 = vadd.f32 %v1551_v42, %v1550_v58  ;;  %v1295_v41 = vpop.f32.mrf.mxu3 }
 0x1da   : > { %v1618_v6 = vsel %vm1527_vm5, %v1587_v25, 0.0  ;;  %v1326_v47 = vadd.f32 %v1295_v41, %v1228_v34  ;;  %v1056_v13 = vpop.f32.mrf.mxu1  ;;  %v1396_v11 = vpop.f32.mrf.mxu0  ;;  %1488 = vst.msk [vmem:[%s2792_s17 + $0x30] sm:$0xf] %vm1475_vm3, %v1467_v26 }
 0x1db   : > { %v1619_v49 = vadd.f32 %v1618_v6, %v1617_v0  ;;  %v1085_v28 = vadd.f32 %v1056_v13, %v2723_v53 }
 0x1dc   : > { %v1424_v33 = vadd.f32 %v1393_v51, %v1326_v47 }
 0x1dd   : > { %v1229_v30 = vadd.f32 %v1200_v1, %v1085_v28 }
 0x1de   : > { %v1448_v17 = vadd.f32 %v2779_v50, %v1424_v33 }
 0x1e0   : > { %v1468_v10 = vpack.c.bf16 %v1448_v17, %v1448_v17  ;;  %v1520_v38 = vsel %vm1500_vm4, %v1448_v17, 0.0 }
 0x1e1   : > { %v1553_v22 = vsel %vm1527_vm5, %v1520_v38, 0.0  ;;  %v1588_v60 = vmul.f32 %v1520_v38, %v1448_v17  ;;  %v1298_v12 = vpop.f32.mrf.mxu3 }
 0x1e2   : > { %v1554_v39 = vadd.f32 %v1553_v22, %v1552_v14  ;;  %v1327_v20 = vadd.f32 %v1298_v12, %v1229_v30  ;;  %v1058_v52 = vpop.f32.mrf.mxu1  ;;  %1489 = vst.msk [vmem:[%s2792_s17 + $0x34] sm:$0xf] %vm1475_vm3, %v1468_v10  ;;  %v1398_v53 = vpop.f32.mrf.mxu0 }
 0x1e3   : > { %v1620_v31 = vsel %vm1527_vm5, %v1588_v60, 0.0  ;;  %v1086_v3 = vadd.f32 %v1058_v52, %v2728_v46 }
 0x1e4   : > { %v1621_v43 = vadd.f32 %v1620_v31, %v1619_v49  ;;  %v1425_v37 = vadd.f32 %v1396_v11, %v1327_v20 }
 0x1e5   : > { %v1230_v44 = vadd.f32 %v1202_v32, %v1086_v3 }
 0x1e6   : > { %v1449_v54 = vadd.f32 %v2779_v50, %v1425_v37 }
 0x1e8   : > { %v1469_v19 = vpack.c.bf16 %v1449_v54, %v1449_v54  ;;  %v1555_v5 = vsel %vm1527_vm5, %v1449_v54, 0.0  ;;  %v1589_v16 = vmul.f32 %v1449_v54, %v1449_v54 }
 0x1e9   : > { %v1556_v40 = vadd.f32 %v1555_v5, %v1554_v39  ;;  %v1300_v27 = vpop.f32.mrf.mxu3 }
 0x1ea   : > { %v1622_v45 = vsel %vm1527_vm5, %v1589_v16, 0.0  ;;  %v1328_v35 = vadd.f32 %v1300_v27, %v1230_v44  ;;  %v1061_v8 = vpop.f32.mrf.mxu1  ;;  %1490 = vst.msk [vmem:[%s2792_s17 + $0x38] sm:$0xf] %vm1475_vm3, %v1469_v19  ;;  %v1401_v62 = vpop.f32.mrf.mxu0 }
 0x1eb   : > { %v1623_v4 = vadd.f32 %v1622_v45, %v1621_v43  ;;  %v1087_v46 = vadd.f32 %v1061_v8, %v2736_v57  ;;  %v1207_v57 = vpop.f32.mrf.mxu2 }
 0x1ec   : > { %v1426_v7 = vadd.f32 %v1398_v53, %v1328_v35 }
 0x1ed   : > { %v1231_v9 = vadd.f32 %v1205_v59, %v1087_v46 }
 0x1ee   : > { %v1450_v21 = vadd.f32 %v2779_v50, %v1426_v7 }
 0x1f0   : > { %v1470_v36 = vpack.c.bf16 %v1450_v21, %v1450_v21  ;;  %v1522_v18 = vsel %vm1500_vm4, %v1450_v21, 0.0 }
 0x1f1   : > { %v1557_v58 = vsel %vm1527_vm5, %v1522_v18, 0.0  ;;  %v1590_v61 = vmul.f32 %v1522_v18, %v1450_v21  ;;  %v1303_v29 = vpop.f32.mrf.mxu3 }
 0x1f2   : > { %v1558_v51 = vadd.f32 %v1557_v58, %v1556_v40  ;;  %v1329_v15 = vadd.f32 %v1303_v29, %v1231_v9  ;;  %v1063_v0 = vpop.f32.mrf.mxu1  ;;  %1491 = vst.msk [vmem:[%s2792_s17 + $0x3c] sm:$0xf] %vm1475_vm3, %v1470_v36  ;;  %v1403_v42 = vpop.f32.mrf.mxu0 }
 0x1f3   : > { %v1624_v24 = vsel %vm1527_vm5, %v1590_v61, 0.0  ;;  %v1088_v63 = vadd.f32 %v1063_v0, %v2746_v2  ;;  %v1210_v17 = vpop.f32.mrf.mxu2 }
 0x1f4   : > { %v1625_v48 = vadd.f32 %v1624_v24, %v1623_v4  ;;  %v1427_v1 = vadd.f32 %v1401_v62, %v1329_v15 }
 0x1f5   : > { %v1232_v41 = vadd.f32 %v1207_v57, %v1088_v63 }
 0x1f6   : > { %v1451_v26 = vadd.f32 %v2779_v50, %v1427_v1 }
 0x1f8   : > { %v1471_v25 = vpack.c.bf16 %v1451_v26, %v1451_v26  ;;  %v1559_v34 = vsel %vm1527_vm5, %v1451_v26, 0.0  ;;  %v1591_v14 = vmul.f32 %v1451_v26, %v1451_v26 }
 0x1f9   : > { %v1560_v6 = vadd.f32 %v1559_v34, %v1558_v51  ;;  %v1305_v47 = vpop.f32.mrf.mxu3 }
 0x1fa   : > { %v1626_v13 = vsel %vm1527_vm5, %v1591_v14, 0.0  ;;  %v1330_v11 = vadd.f32 %v1305_v47, %v1232_v41  ;;  %v1066_v49 = vpop.f32.mrf.mxu1  ;;  %1492 = vst.msk [vmem:[%s2792_s17 + $0x40] sm:$0xf] %vm1475_vm3, %v1471_v25  ;;  %v1406_v12 = vpop.f32.mrf.mxu0 }
 0x1fb   : > { %v1627_v33 = vadd.f32 %v1626_v13, %v1625_v48  ;;  %v1089_v2 = vadd.f32 %v1066_v49, %v2757_v23  ;;  %v1212_v54 = vpop.f32.mrf.mxu2 }
 0x1fc   : > { %v1428_v28 = vadd.f32 %v1403_v42, %v1330_v11 }
 0x1fd   : > { %v1233_v30 = vadd.f32 %v1210_v17, %v1089_v2 }
 0x1fe   : > { %v1452_v32 = vadd.f32 %v2779_v50, %v1428_v28 }
 0x200   : > { %v1472_v10 = vpack.c.bf16 %v1452_v32, %v1452_v32  ;;  %v1524_v38 = vsel %vm1500_vm4, %v1452_v32, 0.0 }
 0x201   : > { %v1561_v22 = vsel %vm1527_vm5, %v1524_v38, 0.0  ;;  %v1592_v60 = vmul.f32 %v1524_v38, %v1452_v32  ;;  %v1308_v39 = vpop.f32.mrf.mxu3 }
 0x202   : > { %v1562_v20 = vadd.f32 %v1561_v22, %v1560_v6  ;;  %v1331_v52 = vadd.f32 %v1308_v39, %v1233_v30  ;;  %v1068_v31 = vpop.f32.mrf.mxu1  ;;  %1493 = vst.msk [vmem:[%s2792_s17 + $0x44] sm:$0xf] %vm1475_vm3, %v1472_v10  ;;  %v1408_v35 = vpop.f32.mrf.mxu0 }
 0x203   : > { %v1628_v23 = vsel %vm1527_vm5, %v1592_v60, 0.0  ;;  %v1090_v37 = vadd.f32 %v1068_v31, %v2768_v56 }
 0x204   : > { %v1629_v53 = vadd.f32 %v1628_v23, %v1627_v33  ;;  %v1429_v43 = vadd.f32 %v1406_v12, %v1331_v52 }
 0x205   : > { %v1234_v44 = vadd.f32 %v1212_v54, %v1090_v37 }
 0x206   : > { %v1453_v3 = vadd.f32 %v2779_v50, %v1429_v43 }
 0x208   : > { %v1473_v19 = vpack.c.bf16 %v1453_v3, %v1453_v3  ;;  %v1563_v5 = vsel %vm1527_vm5, %v1453_v3, 0.0  ;;  %v1593_v16 = vmul.f32 %v1453_v3, %v1453_v3 }
 0x209   : > { %v1564_v40 = vadd.f32 %v1563_v5, %v1562_v20  ;;  %v1310_v59 = vpop.f32.mrf.mxu3 }
 0x20a   : > { %v1630_v27 = vsel %vm1527_vm5, %v1593_v16, 0.0  ;;  %v1332_v45 = vadd.f32 %v1310_v59, %v1234_v44  ;;  %1494 = vst.msk [vmem:[%s2792_s17 + $0x48] sm:$0xf] %vm1475_vm3, %v1473_v19 }
 0x20b   : > { %v1631_v56 = vadd.f32 %v1630_v27, %v1629_v53 }
 0x20c   : > { %v1430_v8 = vadd.f32 %v1408_v35, %v1332_v45 }
 0x20e   : > { %v1454_v4 = vadd.f32 %v2779_v50, %v1430_v8 }
 0x210   : > { %v1474_v7 = vpack.c.bf16 %v1454_v4, %v1454_v4  ;;  %v1526_v46 = vsel %vm1500_vm4, %v1454_v4, 0.0 }
 0x211   : > { %v1565_v62 = vsel %vm1527_vm5, %v1526_v46, 0.0  ;;  %v1594_v21 = vmul.f32 %v1526_v46, %v1454_v4 }
 0x212   : > { %v1566_v36 = vadd.f32 %v1565_v62, %v1564_v40  ;;  %1495 = vst.msk [vmem:[%s2792_s17 + $0x4c] sm:$0xf] %vm1475_vm3, %v1474_v7 }
 0x213   : > { %v1632_v18 = vsel %vm1527_vm5, %v1594_v21, 0.0 }
 0x214   : > { %2172 = shalt.err (!%p2169_p3)
}
 0x215   : > { %s2269_s17 = smov 64   ;;  %s2270_s26 = smov 4   ;;  %v1567_v50 = vrot.slane %v1566_v36, 4  ;;  %v1633_v55 = vadd.f32 %v1632_v18, %v1631_v56  ;;  %vm1573_vm6 = vcmask 188416  }
 0x216   : > { %2093 = dma.vmem_to_hbm [thread:$0]  (%p2341_p5), %s1663_s7, 1280, %s1665_s8, %s1642_s9, %s2269_s17, %s2269_s17, %s2270_s26  }
 0x217   : > { %v1634_v9 = vrot.slane %v1633_v55, 4  ;;  %v1568_v58 = vadd.f32 %v1567_v50, %v1566_v36  ;;  %s1676_s10 = scalar_lea.hbm %s3033_s4, %s2322_s22  ;;  %s1646_s11 = sand.u32 1, %s2322_s22  }
 0x218   : > { %s1689_s15 = scalar_lea.hbm %s3034_s5, %s2322_s22  ;;  %s227_s16 = scalar_lea.vmem [#allocation4], %s2774_s13 }
 0x219   : > { %v1635_v61 = vadd.f32 %v1634_v9, %v1633_v55  ;;  %v1569_v29 = vrot.slane %v1568_v58, 2  ;;  %s2969_s7 = sshll.u32 %s227_s16, 4  ;;  %s2971_s8 = sshll.u32 %s1676_s10, 4  ;;  %s1679_s7 = int_to_ptr.vmem [resolvable:$true] %s2969_s7  ;;  %s1681_s8 = int_to_ptr.hbm [resolvable:$true] %s2971_s8 }
 0x21a   : > { %s233_s9 = scalar_lea.vmem [#allocation6], %s2774_s13  ;;  %s2976_s17 = sshll.u32 %s1689_s15, 4  ;;  %s1694_s17 = int_to_ptr.hbm [resolvable:$true] %s2976_s17 }
 0x21b   : > { %v1570_v51 = vadd.f32 %v1569_v29, %v1568_v58  ;;  %v1636_v15 = vrot.slane %v1635_v61, 2  ;;  %s2974_s25 = sshll.u32 %s233_s9, 4  ;;  %s1647_s22 = scalar_lea.sflag [#allocation5], %s1646_s11  ;;  %s1692_s25 = int_to_ptr.vmem [resolvable:$true] %s2974_s25 }
 0x21c   : > { %s2187_s26 = sshra.s32 %s1681_s8, 4  ;;  %s2193_s10 = scalar_lea.hbm %s3033_s4, 2  ;;  %s2188_s26 = int_to_ptr.hbm [resolvable:$true] %s2187_s26 }
 0x21d   : > { %v1571_v0 = vrot.slane %v1570_v51, 1  ;;  %v1637_v24 = vadd.f32 %v1636_v15, %v1635_v61  ;;  %s2189_s13 = scalar_lea.hbm %s2188_s26, 1  ;;  %p2194_p9 = scmp.lt.s32.totalorder %s2188_s26, %s3033_s4 }
 0x21e   : > { %p2190_p4 = scmp.ne.s32.totalorder %s2188_s26, %s2189_s13  ;;  %p2195_p10 = scmp.lt.s32.totalorder %s2193_s10, %s2189_s13 }
 0x21f   : > { %v1572_v57 = vadd.f32 %v1571_v0, %v1570_v51  ;;  %v1638_v48 = vrot.slane %v1637_v24, 1 }
 0x220   : > { %p2191_p7 = pnand %p2190_p4, %p2341_p5  ;;  %p2196_p11 = por %p2195_p10, %p2194_p9 }
 0x221   : > { %1574 = vst.msk [vmem:[%s227_s16] sm:$0x1] %vm1573_vm6, %v1572_v57  ;;  %v1639_v1 = vadd.f32 %v1638_v48, %v1637_v24 }
 0x222   : > { %p2192_p8 = pneg %p2191_p7 }
 0x224   : > { %p2197_p12 = pnand %p2196_p11, %p2192_p8 }
 0x226   : > { %2200 = shalt.err (!%p2197_p12)
}
 0x227   : > { %2094 = dma.vmem_to_hbm [thread:$0]  (%p2341_p5), %s1679_s7, 16, %s1681_s8, %s1647_s22   ;;  %1640 = vst.msk [vmem:[%s233_s9] sm:$0x1] %vm1573_vm6, %v1639_v1 }
 0x228   : > { %s2215_s11 = sshra.s32 %s1694_s17, 4  ;;  %s2221_s13 = scalar_lea.hbm %s3034_s5, 2  ;;  %s2216_s11 = int_to_ptr.hbm [resolvable:$true] %s2215_s11 }
 0x229   : > { %s2217_s15 = scalar_lea.hbm %s2216_s11, 1  ;;  %p2222_p2 = scmp.lt.s32.totalorder %s2216_s11, %s3034_s5 }
 0x22a   : > { %p2218_p13 = scmp.ne.s32.totalorder %s2216_s11, %s2217_s15  ;;  %p2223_p3 = scmp.lt.s32.totalorder %s2221_s13, %s2217_s15 }
 0x22c   : > { %p2219_p0 = pnand %p2218_p13, %p2341_p5  ;;  %p2224_p4 = por %p2223_p3, %p2222_p2 }
 0x22e   : > { %p2220_p1 = pneg %p2219_p0 }
 0x230   : > { %p2225_p7 = pnand %p2224_p4, %p2220_p1 }
 0x232   : > { %2228 = shalt.err (!%p2225_p7)
}
 0x233   : > { %2095 = dma.vmem_to_hbm [thread:$0]  (%p2341_p5), %s1692_s25, 16, %s1694_s17, %s1647_s22  }
 0x234 PF: > { %p2109_p8 = scmp.ge.s32.totalorder %s2267_s21, 2  ;;  %s1705_s7 = sand.u32 1, %s2255_s18  }
 0x235   : > { %s1706_s8 = scalar_lea.sflag [#allocation3], %s1705_s7 }
 0x236   : > { %p2100_p9 = pnand %p2109_p8, %p2345_p6 }
 0x238   : > { %p2101_p10 = pneg %p2100_p9 }
 0x23a   : > { %2246 = dma.done.wait (%p2101_p10), %s1706_s8, 1280  }
 0x23b   : > { %2248 = vsyncadd (%p2101_p10), %s1706_s8, 4294966016  ;;  %s1715_s28 = sand.u32 1, %s1806_s23  }
 0x23c   : > { %s1716_s9 = scalar_lea.sflag [#allocation5], %s1715_s28 }
 0x23d   : > { %2250 = dma.done.wait (%p2101_p10), %s1716_s9, 32  }
 0x23e   : > { %2252 = vsyncadd (%p2101_p10), %s1716_s9, 4294967264  ;;  %p19_p5 = scmp.ge.s32.totalorder %s2326_s24, 4   ;;  %s3042_s18 = smov %s2259_s19 }
 0x23f   : > { %s3043_s19 = smov %s2263_s20  ;;  %s3044_s20 = smov %s2339_s27 }
 0x240   : > { %s3045_s21 = smov %s2326_s24  ;;  %21 = sbr.rel (!%p19_p5) target bundleno = 5 (0x5), region = 107 }
 0x245   :  { %1730 = vsyncpa [#allocation3], 1 }
 0x246   :  { %1732 = vsyncpa [#allocation3 + $0x1], 1 }
 0x247   :  { %1733 = vsyncpa [#allocation5], 1 }
 0x248   :  { %1735 = vsyncpa [#allocation5 + $0x1], 1 }

</bundles_post_ra>
